<compile_context>
chip_gen: v7x
topology: tpu7x:2x2x1
jax: 0.10.0
libtpu: 0.0.40
codegen_flags: <defaults>
</compile_context>

<pallas_src>
import jax
import jax.numpy as jnp
from jax.experimental import pallas as pl
from jax.experimental.pallas import tpu as pltpu

# ----------------------- configuration (small, synthetic) -------------------
HIDDEN_SIZE = 32                    # hidden_size
DEC_NUM_LAYERS = 2                  # dec_num_layers
OUTPUT_SIZE = 16                    # output_size
INPUT_DIM = 3 * HIDDEN_SIZE + 100   # GRU input_size = 3*hidden + 100 = 196
BATCH = 2
SEQ = 8


# ----------------------------- Pallas kernel --------------------------------
def _decoder_rnn_kernel(
    x_ref,                                    # (T*B, D)   bf16 time-major rows
    wih0_ref, whh0_ref, b0_ref, bhn0_ref,     # layer-0 gate-fused GRU params
    wih1_ref, whh1_ref, b1_ref, bhn1_ref,     # layer-1 gate-fused GRU params
    wout_ref, bout_ref,                       # Linear head
    out_ref,                                  # (T*B, O)   f32 log-probs
    hid_ref,                                  # (L, B, H)  f32 final hidden states
    seq_sc,                                   # (T*B, H)   f32 layer outputs
    gir_sc, giz_sc, gin_sc,                   # (T*B, H)   f32 hoisted gi per gate
):
    TB, H = seq_sc.shape
    B = hid_ref.shape[1]
    T = TB // B

    def precompute_gates(x_flat, wih_ref, b_ref):
        # Hoisted input-to-hidden contribution: ONE fused (T*B, D) @ (D, 3H)
        # MXU pass per layer (off the recurrent critical path).  Biases are
        # pre-folded in the wrapper (r/z: bih + bhh, n: bih only).
        w = wih_ref[...].astype(x_flat.dtype)   # layer 0: bf16 (no-op); layer 1: f32
        gi = jnp.dot(x_flat, w, preferred_element_type=jnp.float32) + b_ref[...]
        # One-time per-layer gate split (lane-offset slices, off the serial path).
        gir_sc[...] = gi[:, 0:H]
        giz_sc[...] = gi[:, H:2 * H]
        gin_sc[...] = gi[:, 2 * H:3 * H]

    def run_layer(layer_idx, whh_ref, bhn_ref):
        # One-time per-layer recurrent-weight load + gate split, converted to
        # f32 once outside the loop (hidden state / gate math stay f32).
        whh = whh_ref[...].astype(jnp.float32)            # (H, 3H)
        whh_r = whh[:, 0:H]
        whh_z = whh[:, H:2 * H]
        whh_n = whh[:, 2 * H:3 * H]
        bhn = bhn_ref[...]                                # (1, H) f32

        # TODO(synk): replace the three jnp.dot calls with MXU-resident W_hh
        # (matmul_push_rhs once per gate, matmul_acc_lhs/pop per step).
        h = jnp.zeros((B, H), jnp.float32)
        for t in range(T):                                # static unroll, T=8
            rows = pl.ds(t * B, B)                        # static sublane slice
            # Only the h-dependent matmuls remain on the serial path.
            gh_r = jnp.dot(h, whh_r, preferred_element_type=jnp.float32)
            gh_z = jnp.dot(h, whh_z, preferred_element_type=jnp.float32)
            gh_n = jnp.dot(h, whh_n, preferred_element_type=jnp.float32) + bhn
            r = jax.nn.sigmoid(gir_sc[rows, :] + gh_r)
            z = jax.nn.sigmoid(giz_sc[rows, :] + gh_z)
            n = jnp.tanh(gin_sc[rows, :] + r * gh_n)
            h = (1.0 - z) * n + z * h
            seq_sc[rows, :] = h                           # layer output at t
        hid_ref[layer_idx] = h

    # Layer 0: gi from relu(raw bf16 input) -> native bf16 MXU pass.
    precompute_gates(jnp.maximum(x_ref[...], 0.0), wih0_ref, b0_ref)
    run_layer(0, whh0_ref, bhn0_ref)
    # ORDERING GUARD: layer-1 gi must be computed from the layer-0 outputs held
    # in seq_sc BEFORE run_layer(1) overwrites seq_sc with layer-1 outputs.
    # Do not reorder / make this read lazy.
    precompute_gates(seq_sc[...], wih1_ref, b1_ref)
    run_layer(1, whh1_ref, bhn1_ref)

    # Output head: Linear + LogSoftmax(dim=-1), written lane-dense as (T*B, O).
    # (If OUTPUT_SIZE ever grows to a real vocab, pad O to a multiple of 128.)
    wout = wout_ref[...].astype(jnp.float32)
    logits = jnp.dot(seq_sc[...], wout,
                     preferred_element_type=jnp.float32) + bout_ref[...]
    m = jnp.max(logits, axis=-1, keepdims=True)
    lse = m + jnp.log(jnp.sum(jnp.exp(logits - m), axis=-1, keepdims=True))
    out_ref[...] = logits - lse


# ------------------------------- wrapper -------------------------------------
def _fold_biases(bih, bhh, H):
    # r/z gates: bih + bhh folded; n gate: bih only (bhh_n stays inside r*(...)).
    return jnp.concatenate(
        [bih[:, 0:2 * H] + bhh[:, 0:2 * H], bih[:, 2 * H:3 * H]], axis=1)


@jax.jit
def decoder_rnn_forward(x, params):
    """x: (B, T, 3*H+100) f32.  Returns (log_probs (B,T,O), hidden (L,B,H))."""
    B, T, D = x.shape
    H, O, L = HIDDEN_SIZE, OUTPUT_SIZE, DEC_NUM_LAYERS
    wdt = jnp.bfloat16   # storage / MXU-operand dtype for x and weight matrices

    # Time-major flattened rows: row index = t*B + b.
    x_flat = jnp.transpose(x, (1, 0, 2)).reshape(T * B, D).astype(wdt)

    kernel_args = [x_flat]
    for l in range(L):
        # Gate-FUSED (lane-axis) weights: (D_l, 3H) / (H, 3H).
        kernel_args += [
            params[f"wih{l}"].astype(wdt),
            params[f"whh{l}"].astype(wdt),
            _fold_biases(params[f"bih{l}"], params[f"bhh{l}"], H),   # (1, 3H) f32
            params[f"bhh{l}"][:, 2 * H:3 * H],                        # (1, H) f32
        ]
    kernel_args += [params["wout"].astype(wdt), params["bout"]]

    # Advisory cost estimate (helps XLA schedule around this tiny custom call).
    flops = (2 * T * B * 3 * H * (D + H)            # hoisted gi matmuls (L0 + L1)
             + 2 * T * B * 3 * H * H * L            # recurrent h @ W_hh
             + 2 * T * B * H * O                    # output head
             + 12 * T * B * H * L)                  # gate elementwise math
    transcendentals = T * B * (3 * H * L + 2 * O)
    bytes_accessed = (sum(int(a.size) * a.dtype.itemsize for a in kernel_args)
                      + 4 * (T * B * O + L * B * H))

    vmem = pl.BlockSpec(memory_space=pltpu.MemorySpace.VMEM)
    out_flat, hidden = pl.pallas_call(
        _decoder_rnn_kernel,
        out_shape=(
            jax.ShapeDtypeStruct((T * B, O), jnp.float32),
            jax.ShapeDtypeStruct((L, B, H), jnp.float32),
        ),
        in_specs=[vmem] * len(kernel_args),
        out_specs=(vmem, vmem),
        scratch_shapes=[pltpu.VMEM((T * B, H), jnp.float32)   # seq, gi r/z/n
                        for _ in range(4)],
        compiler_params=pltpu.CompilerParams(
            # Whole-array VMEM residency; post-padding footprint is well under
            # 1 MiB on v5e/v6e (128 MiB VMEM) and v7x (64 MiB) — no grid needed.
            vmem_limit_bytes=4 * 1024 * 1024),
        cost_estimate=pl.CostEstimate(flops=flops,
                                      transcendentals=transcendentals,
                                      bytes_accessed=bytes_accessed),
    )(*kernel_args)

    log_probs = jnp.transpose(out_flat.reshape(T, B, O), (1, 0, 2))
    return log_probs, hidden


# ------------------------- deterministic params ------------------------------
def init_params(key):
    H, O, D = HIDDEN_SIZE, OUTPUT_SIZE, INPUT_DIM
    scale = 1.0 / jnp.sqrt(jnp.float32(H))

    def u(k, shape):
        return jax.random.uniform(k, shape, jnp.float32, -scale, scale)

    ks = jax.random.split(key, 10)
    # Fused GRU weights stored as (in_features, 3H) / (H, O): transposed vs torch.
    return {
        "wih0": u(ks[0], (D, 3 * H)),
        "whh0": u(ks[1], (H, 3 * H)),
        "bih0": u(ks[2], (1, 3 * H)),
        "bhh0": u(ks[3], (1, 3 * H)),
        "wih1": u(ks[4], (H, 3 * H)),
        "whh1": u(ks[5], (H, 3 * H)),
        "bih1": u(ks[6], (1, 3 * H)),
        "bhh1": u(ks[7], (1, 3 * H)),
        "wout": u(ks[8], (H, O)),
        "bout": u(ks[9], (1, O)),
    }


# ------------------------- pure-JAX reference check --------------------------
def reference_forward(x, p):
    H = HIDDEN_SIZE
    B, T, _ = x.shape
    inp = jnp.maximum(x, 0.0)
    hiddens = []
    for l in range(DEC_NUM_LAYERS):
        wih, whh = p[f"wih{l}"], p[f"whh{l}"]
        bih, bhh = p[f"bih{l}"], p[f"bhh{l}"]
        h = jnp.zeros((B, H), jnp.float32)
        outs = []
        for t in range(T):
            gi = inp[:, t, :] @ wih + bih
            gh = h @ whh + bhh
            r = jax.nn.sigmoid(gi[:, :H] + gh[:, :H])
            z = jax.nn.sigmoid(gi[:, H:2 * H] + gh[:, H:2 * H])
            n = jnp.tanh(gi[:, 2 * H:] + r * gh[:, 2 * H:])
            h = (1.0 - z) * n + z * h
            outs.append(h)
        inp = jnp.stack(outs, axis=1)
        hiddens.append(h)
    logits = inp @ p["wout"] + p["bout"]
    return jax.nn.log_softmax(logits, axis=-1), jnp.stack(hiddens, axis=0)


# ---------------------------------- main --------------------------------------
if __name__ == "__main__":
    key = jax.random.PRNGKey(0)
    k_x, k_p = jax.random.split(key)

    x = jax.random.normal(k_x, (BATCH, SEQ, INPUT_DIM), jnp.float32)
    params = init_params(k_p)

    log_probs, hidden = decoder_rnn_forward(x, params)
    jax.block_until_ready((log_probs, hidden))

    assert log_probs.shape == (BATCH, SEQ, OUTPUT_SIZE)
    assert hidden.shape == (DEC_NUM_LAYERS, BATCH, HIDDEN_SIZE)

    # (1) Structural check: reference evaluated on the same bf16-rounded x /
    #     weight matrices (isolates kernel math from the intentional bf16
    #     storage cast; hidden state / gate math are f32 in both).
    q = lambda a: a.astype(jnp.bfloat16).astype(jnp.float32)
    params_q = {k: (q(v) if k.startswith("w") else v) for k, v in params.items()}
    ref_lp_q, ref_h_q = reference_forward(q(x), params_q)
    assert jnp.allclose(log_probs, ref_lp_q, atol=2e-3, rtol=2e-3)
    assert jnp.allclose(hidden, ref_h_q, atol=2e-3, rtol=2e-3)

    # (2) End-to-end check vs. the full-f32 reference (looser tolerance because
    #     x / weights are bf16, as anticipated by the perf review).
    ref_lp, ref_h = reference_forward(x, params)
    assert jnp.allclose(log_probs, ref_lp, atol=5e-2, rtol=5e-2)
    assert jnp.allclose(hidden, ref_h, atol=5e-2, rtol=5e-2)

    print("KERNEL_OK")
</pallas_src>

<mosaic_0001>
module attributes {stable_mosaic.version = 11 : i64} {
  func.func @_decoder_rnn_kernel(%arg0: memref<16x196xbf16, #tpu.memory_space<vmem>>, %arg1: memref<196x96xbf16, #tpu.memory_space<vmem>>, %arg2: memref<32x96xbf16, #tpu.memory_space<vmem>>, %arg3: memref<1x96xf32, #tpu.memory_space<vmem>>, %arg4: memref<1x32xf32, #tpu.memory_space<vmem>>, %arg5: memref<32x96xbf16, #tpu.memory_space<vmem>>, %arg6: memref<32x96xbf16, #tpu.memory_space<vmem>>, %arg7: memref<1x96xf32, #tpu.memory_space<vmem>>, %arg8: memref<1x32xf32, #tpu.memory_space<vmem>>, %arg9: memref<32x16xbf16, #tpu.memory_space<vmem>>, %arg10: memref<1x16xf32, #tpu.memory_space<vmem>>, %arg11: memref<16x16xf32, #tpu.memory_space<vmem>>, %arg12: memref<2x2x32xf32, #tpu.memory_space<vmem>>, %arg13: memref<16x32xf32, #tpu.memory_space<vmem>>, %arg14: memref<16x32xf32, #tpu.memory_space<vmem>>, %arg15: memref<16x32xf32, #tpu.memory_space<vmem>>, %arg16: memref<16x32xf32, #tpu.memory_space<vmem>>) attributes {dimension_semantics = [], scalar_prefetch = 0 : i64, scratch_operands = 4 : i64, tpu.core_type = #tpu.core_type<tc>} {
    %c0 = arith.constant 0 : index
    %c0_0 = arith.constant 0 : index
    %0 = vector.load %arg0[%c0, %c0_0] : memref<16x196xbf16, #tpu.memory_space<vmem>>, vector<16x196xbf16>
    %cst = arith.constant 0.000000e+00 : bf16
    %1 = vector.broadcast %cst : bf16 to vector<16x196xbf16>
    %2 = arith.maximumf %0, %1 : vector<16x196xbf16>
    %c0_1 = arith.constant 0 : index
    %c0_2 = arith.constant 0 : index
    %3 = vector.load %arg1[%c0_1, %c0_2] : memref<196x96xbf16, #tpu.memory_space<vmem>>, vector<196x96xbf16>
    %cst_3 = arith.constant dense<0.000000e+00> : vector<16x96xf32>
    %4 = tpu.matmul %2, %3, %cst_3 {dimension_numbers = #tpu.dot_dimension_numbers<[1], [0], [0], [1], [0, 0, 1, 1], [], []>} : vector<16x196xbf16>, vector<196x96xbf16>, vector<16x96xf32> -> vector<16x96xf32>
    %c0_4 = arith.constant 0 : index
    %c0_5 = arith.constant 0 : index
    %5 = vector.load %arg3[%c0_4, %c0_5] : memref<1x96xf32, #tpu.memory_space<vmem>>, vector<1x96xf32>
    %6 = vector.broadcast %5 : vector<1x96xf32> to vector<16x96xf32>
    %7 = arith.addf %4, %6 : vector<16x96xf32>
    %8 = vector.extract_strided_slice %7 {offsets = [0, 0], sizes = [16, 32], strides = [1, 1]} : vector<16x96xf32> to vector<16x32xf32>
    %c0_6 = arith.constant 0 : index
    %c0_7 = arith.constant 0 : index
    %9 = vector.load %arg14[%c0_6, %c0_7] : memref<16x32xf32, #tpu.memory_space<vmem>>, vector<16x32xf32>
    tpu.vector_store %arg14[%c0_6, %c0_7], %8 {strides = array<i32>} : memref<16x32xf32, #tpu.memory_space<vmem>>, vector<16x32xf32>,
    %10 = vector.extract_strided_slice %7 {offsets = [0, 32], sizes = [16, 32], strides = [1, 1]} : vector<16x96xf32> to vector<16x32xf32>
    %c0_8 = arith.constant 0 : index
    %c0_9 = arith.constant 0 : index
    %11 = vector.load %arg15[%c0_8, %c0_9] : memref<16x32xf32, #tpu.memory_space<vmem>>, vector<16x32xf32>
    tpu.vector_store %arg15[%c0_8, %c0_9], %10 {strides = array<i32>} : memref<16x32xf32, #tpu.memory_space<vmem>>, vector<16x32xf32>,
    %12 = vector.extract_strided_slice %7 {offsets = [0, 64], sizes = [16, 32], strides = [1, 1]} : vector<16x96xf32> to vector<16x32xf32>
    %c0_10 = arith.constant 0 : index
    %c0_11 = arith.constant 0 : index
    %13 = vector.load %arg16[%c0_10, %c0_11] : memref<16x32xf32, #tpu.memory_space<vmem>>, vector<16x32xf32>
    tpu.vector_store %arg16[%c0_10, %c0_11], %12 {strides = array<i32>} : memref<16x32xf32, #tpu.memory_space<vmem>>, vector<16x32xf32>,
    %c0_12 = arith.constant 0 : index
    %c0_13 = arith.constant 0 : index
    %14 = vector.load %arg2[%c0_12, %c0_13] : memref<32x96xbf16, #tpu.memory_space<vmem>>, vector<32x96xbf16>
    %15 = arith.extf %14 : vector<32x96xbf16> to vector<32x96xf32>
    %16 = vector.extract_strided_slice %15 {offsets = [0, 0], sizes = [32, 32], strides = [1, 1]} : vector<32x96xf32> to vector<32x32xf32>
    %17 = vector.extract_strided_slice %15 {offsets = [0, 32], sizes = [32, 32], strides = [1, 1]} : vector<32x96xf32> to vector<32x32xf32>
    %18 = vector.extract_strided_slice %15 {offsets = [0, 64], sizes = [32, 32], strides = [1, 1]} : vector<32x96xf32> to vector<32x32xf32>
    %c0_14 = arith.constant 0 : index
    %c0_15 = arith.constant 0 : index
    %19 = vector.load %arg4[%c0_14, %c0_15] : memref<1x32xf32, #tpu.memory_space<vmem>>, vector<1x32xf32>
    %cst_16 = arith.constant 0.000000e+00 : f32
    %20 = vector.broadcast %cst_16 : f32 to vector<2x32xf32>
    %cst_17 = arith.constant dense<0.000000e+00> : vector<2x32xf32>
    %21 = tpu.matmul %20, %16, %cst_17 {dimension_numbers = #tpu.dot_dimension_numbers<[1], [0], [0], [1], [0, 0, 1, 1], [], []>} : vector<2x32xf32>, vector<32x32xf32>, vector<2x32xf32> -> vector<2x32xf32>
    %cst_18 = arith.constant dense<0.000000e+00> : vector<2x32xf32>
    %22 = tpu.matmul %20, %17, %cst_18 {dimension_numbers = #tpu.dot_dimension_numbers<[1], [0], [0], [1], [0, 0, 1, 1], [], []>} : vector<2x32xf32>, vector<32x32xf32>, vector<2x32xf32> -> vector<2x32xf32>
    %cst_19 = arith.constant dense<0.000000e+00> : vector<2x32xf32>
    %23 = tpu.matmul %20, %18, %cst_19 {dimension_numbers = #tpu.dot_dimension_numbers<[1], [0], [0], [1], [0, 0, 1, 1], [], []>} : vector<2x32xf32>, vector<32x32xf32>, vector<2x32xf32> -> vector<2x32xf32>
    %24 = vector.broadcast %19 : vector<1x32xf32> to vector<2x32xf32>
    %25 = arith.addf %23, %24 : vector<2x32xf32>
    %c0_20 = arith.constant 0 : index
    %c0_21 = arith.constant 0 : index
    %26 = vector.load %arg14[%c0_20, %c0_21] : memref<16x32xf32, #tpu.memory_space<vmem>>, vector<2x32xf32>
    %27 = arith.addf %26, %21 : vector<2x32xf32>
    %28 = arith.negf %27 : vector<2x32xf32>
    %29 = math.exp %28 : vector<2x32xf32>
    %cst_22 = arith.constant 1.000000e+00 : f32
    %30 = vector.broadcast %cst_22 : f32 to vector<2x32xf32>
    %31 = arith.addf %30, %29 : vector<2x32xf32>
    %32 = arith.divf %30, %31 : vector<2x32xf32>
    %c0_23 = arith.constant 0 : index
    %c0_24 = arith.constant 0 : index
    %33 = vector.load %arg15[%c0_23, %c0_24] : memref<16x32xf32, #tpu.memory_space<vmem>>, vector<2x32xf32>
    %34 = arith.addf %33, %22 : vector<2x32xf32>
    %35 = arith.negf %34 : vector<2x32xf32>
    %36 = math.exp %35 : vector<2x32xf32>
    %cst_25 = arith.constant 1.000000e+00 : f32
    %37 = vector.broadcast %cst_25 : f32 to vector<2x32xf32>
    %38 = arith.addf %37, %36 : vector<2x32xf32>
    %39 = arith.divf %37, %38 : vector<2x32xf32>
    %c0_26 = arith.constant 0 : index
    %c0_27 = arith.constant 0 : index
    %40 = vector.load %arg16[%c0_26, %c0_27] : memref<16x32xf32, #tpu.memory_space<vmem>>, vector<2x32xf32>
    %41 = arith.mulf %32, %25 : vector<2x32xf32>
    %42 = arith.addf %40, %41 : vector<2x32xf32>
    %43 = math.tanh %42 : vector<2x32xf32>
    %cst_28 = arith.constant 1.000000e+00 : f32
    %44 = vector.broadcast %cst_28 : f32 to vector<2x32xf32>
    %45 = arith.subf %44, %39 : vector<2x32xf32>
    %46 = arith.mulf %45, %43 : vector<2x32xf32>
    %47 = arith.mulf %39, %20 : vector<2x32xf32>
    %48 = arith.addf %46, %47 : vector<2x32xf32>
    %c0_29 = arith.constant 0 : index
    %c0_30 = arith.constant 0 : index
    %49 = vector.load %arg13[%c0_29, %c0_30] : memref<16x32xf32, #tpu.memory_space<vmem>>, vector<2x32xf32>
    tpu.vector_store %arg13[%c0_29, %c0_30], %48 {strides = array<i32>} : memref<16x32xf32, #tpu.memory_space<vmem>>, vector<2x32xf32>,
    %cst_31 = arith.constant dense<0.000000e+00> : vector<2x32xf32>
    %50 = tpu.matmul %48, %16, %cst_31 {dimension_numbers = #tpu.dot_dimension_numbers<[1], [0], [0], [1], [0, 0, 1, 1], [], []>} : vector<2x32xf32>, vector<32x32xf32>, vector<2x32xf32> -> vector<2x32xf32>
    %cst_32 = arith.constant dense<0.000000e+00> : vector<2x32xf32>
    %51 = tpu.matmul %48, %17, %cst_32 {dimension_numbers = #tpu.dot_dimension_numbers<[1], [0], [0], [1], [0, 0, 1, 1], [], []>} : vector<2x32xf32>, vector<32x32xf32>, vector<2x32xf32> -> vector<2x32xf32>
    %cst_33 = arith.constant dense<0.000000e+00> : vector<2x32xf32>
    %52 = tpu.matmul %48, %18, %cst_33 {dimension_numbers = #tpu.dot_dimension_numbers<[1], [0], [0], [1], [0, 0, 1, 1], [], []>} : vector<2x32xf32>, vector<32x32xf32>, vector<2x32xf32> -> vector<2x32xf32>
    %53 = vector.broadcast %19 : vector<1x32xf32> to vector<2x32xf32>
    %54 = arith.addf %52, %53 : vector<2x32xf32>
    %c2 = arith.constant 2 : index
    %c0_34 = arith.constant 0 : index
    %55 = vector.load %arg14[%c2, %c0_34] : memref<16x32xf32, #tpu.memory_space<vmem>>, vector<2x32xf32>
    %56 = arith.addf %55, %50 : vector<2x32xf32>
    %57 = arith.negf %56 : vector<2x32xf32>
    %58 = math.exp %57 : vector<2x32xf32>
    %cst_35 = arith.constant 1.000000e+00 : f32
    %59 = vector.broadcast %cst_35 : f32 to vector<2x32xf32>
    %60 = arith.addf %59, %58 : vector<2x32xf32>
    %61 = arith.divf %59, %60 : vector<2x32xf32>
    %c2_36 = arith.constant 2 : index
    %c0_37 = arith.constant 0 : index
    %62 = vector.load %arg15[%c2_36, %c0_37] : memref<16x32xf32, #tpu.memory_space<vmem>>, vector<2x32xf32>
    %63 = arith.addf %62, %51 : vector<2x32xf32>
    %64 = arith.negf %63 : vector<2x32xf32>
    %65 = math.exp %64 : vector<2x32xf32>
    %cst_38 = arith.constant 1.000000e+00 : f32
    %66 = vector.broadcast %cst_38 : f32 to vector<2x32xf32>
    %67 = arith.addf %66, %65 : vector<2x32xf32>
    %68 = arith.divf %66, %67 : vector<2x32xf32>
    %c2_39 = arith.constant 2 : index
    %c0_40 = arith.constant 0 : index
    %69 = vector.load %arg16[%c2_39, %c0_40] : memref<16x32xf32, #tpu.memory_space<vmem>>, vector<2x32xf32>
    %70 = arith.mulf %61, %54 : vector<2x32xf32>
    %71 = arith.addf %69, %70 : vector<2x32xf32>
    %72 = math.tanh %71 : vector<2x32xf32>
    %cst_41 = arith.constant 1.000000e+00 : f32
    %73 = vector.broadcast %cst_41 : f32 to vector<2x32xf32>
    %74 = arith.subf %73, %68 : vector<2x32xf32>
    %75 = arith.mulf %74, %72 : vector<2x32xf32>
    %76 = arith.mulf %68, %48 : vector<2x32xf32>
    %77 = arith.addf %75, %76 : vector<2x32xf32>
    %c2_42 = arith.constant 2 : index
    %c0_43 = arith.constant 0 : index
    %78 = vector.load %arg13[%c2_42, %c0_43] : memref<16x32xf32, #tpu.memory_space<vmem>>, vector<2x32xf32>
    tpu.vector_store %arg13[%c2_42, %c0_43], %77 {strides = array<i32>} : memref<16x32xf32, #tpu.memory_space<vmem>>, vector<2x32xf32>,
    %cst_44 = arith.constant dense<0.000000e+00> : vector<2x32xf32>
    %79 = tpu.matmul %77, %16, %cst_44 {dimension_numbers = #tpu.dot_dimension_numbers<[1], [0], [0], [1], [0, 0, 1, 1], [], []>} : vector<2x32xf32>, vector<32x32xf32>, vector<2x32xf32> -> vector<2x32xf32>
    %cst_45 = arith.constant dense<0.000000e+00> : vector<2x32xf32>
    %80 = tpu.matmul %77, %17, %cst_45 {dimension_numbers = #tpu.dot_dimension_numbers<[1], [0], [0], [1], [0, 0, 1, 1], [], []>} : vector<2x32xf32>, vector<32x32xf32>, vector<2x32xf32> -> vector<2x32xf32>
    %cst_46 = arith.constant dense<0.000000e+00> : vector<2x32xf32>
    %81 = tpu.matmul %77, %18, %cst_46 {dimension_numbers = #tpu.dot_dimension_numbers<[1], [0], [0], [1], [0, 0, 1, 1], [], []>} : vector<2x32xf32>, vector<32x32xf32>, vector<2x32xf32> -> vector<2x32xf32>
    %82 = vector.broadcast %19 : vector<1x32xf32> to vector<2x32xf32>
    %83 = arith.addf %81, %82 : vector<2x32xf32>
    %c4 = arith.constant 4 : index
    %c0_47 = arith.constant 0 : index
    %84 = vector.load %arg14[%c4, %c0_47] : memref<16x32xf32, #tpu.memory_space<vmem>>, vector<2x32xf32>
    %85 = arith.addf %84, %79 : vector<2x32xf32>
    %86 = arith.negf %85 : vector<2x32xf32>
    %87 = math.exp %86 : vector<2x32xf32>
    %cst_48 = arith.constant 1.000000e+00 : f32
    %88 = vector.broadcast %cst_48 : f32 to vector<2x32xf32>
    %89 = arith.addf %88, %87 : vector<2x32xf32>
    %90 = arith.divf %88, %89 : vector<2x32xf32>
    %c4_49 = arith.constant 4 : index
    %c0_50 = arith.constant 0 : index
    %91 = vector.load %arg15[%c4_49, %c0_50] : memref<16x32xf32, #tpu.memory_space<vmem>>, vector<2x32xf32>
    %92 = arith.addf %91, %80 : vector<2x32xf32>
    %93 = arith.negf %92 : vector<2x32xf32>
    %94 = math.exp %93 : vector<2x32xf32>
    %cst_51 = arith.constant 1.000000e+00 : f32
    %95 = vector.broadcast %cst_51 : f32 to vector<2x32xf32>
    %96 = arith.addf %95, %94 : vector<2x32xf32>
    %97 = arith.divf %95, %96 : vector<2x32xf32>
    %c4_52 = arith.constant 4 : index
    %c0_53 = arith.constant 0 : index
    %98 = vector.load %arg16[%c4_52, %c0_53] : memref<16x32xf32, #tpu.memory_space<vmem>>, vector<2x32xf32>
    %99 = arith.mulf %90, %83 : vector<2x32xf32>
    %100 = arith.addf %98, %99 : vector<2x32xf32>
    %101 = math.tanh %100 : vector<2x32xf32>
    %cst_54 = arith.constant 1.000000e+00 : f32
    %102 = vector.broadcast %cst_54 : f32 to vector<2x32xf32>
    %103 = arith.subf %102, %97 : vector<2x32xf32>
    %104 = arith.mulf %103, %101 : vector<2x32xf32>
    %105 = arith.mulf %97, %77 : vector<2x32xf32>
    %106 = arith.addf %104, %105 : vector<2x32xf32>
    %c4_55 = arith.constant 4 : index
    %c0_56 = arith.constant 0 : index
    %107 = vector.load %arg13[%c4_55, %c0_56] : memref<16x32xf32, #tpu.memory_space<vmem>>, vector<2x32xf32>
    tpu.vector_store %arg13[%c4_55, %c0_56], %106 {strides = array<i32>} : memref<16x32xf32, #tpu.memory_space<vmem>>, vector<2x32xf32>,
    %cst_57 = arith.constant dense<0.000000e+00> : vector<2x32xf32>
    %108 = tpu.matmul %106, %16, %cst_57 {dimension_numbers = #tpu.dot_dimension_numbers<[1], [0], [0], [1], [0, 0, 1, 1], [], []>} : vector<2x32xf32>, vector<32x32xf32>, vector<2x32xf32> -> vector<2x32xf32>
    %cst_58 = arith.constant dense<0.000000e+00> : vector<2x32xf32>
    %109 = tpu.matmul %106, %17, %cst_58 {dimension_numbers = #tpu.dot_dimension_numbers<[1], [0], [0], [1], [0, 0, 1, 1], [], []>} : vector<2x32xf32>, vector<32x32xf32>, vector<2x32xf32> -> vector<2x32xf32>
    %cst_59 = arith.constant dense<0.000000e+00> : vector<2x32xf32>
    %110 = tpu.matmul %106, %18, %cst_59 {dimension_numbers = #tpu.dot_dimension_numbers<[1], [0], [0], [1], [0, 0, 1, 1], [], []>} : vector<2x32xf32>, vector<32x32xf32>, vector<2x32xf32> -> vector<2x32xf32>
    %111 = vector.broadcast %19 : vector<1x32xf32> to vector<2x32xf32>
    %112 = arith.addf %110, %111 : vector<2x32xf32>
    %c6 = arith.constant 6 : index
    %c0_60 = arith.constant 0 : index
    %113 = vector.load %arg14[%c6, %c0_60] : memref<16x32xf32, #tpu.memory_space<vmem>>, vector<2x32xf32>
    %114 = arith.addf %113, %108 : vector<2x32xf32>
    %115 = arith.negf %114 : vector<2x32xf32>
    %116 = math.exp %115 : vector<2x32xf32>
    %cst_61 = arith.constant 1.000000e+00 : f32
    %117 = vector.broadcast %cst_61 : f32 to vector<2x32xf32>
    %118 = arith.addf %117, %116 : vector<2x32xf32>
    %119 = arith.divf %117, %118 : vector<2x32xf32>
    %c6_62 = arith.constant 6 : index
    %c0_63 = arith.constant 0 : index
    %120 = vector.load %arg15[%c6_62, %c0_63] : memref<16x32xf32, #tpu.memory_space<vmem>>, vector<2x32xf32>
    %121 = arith.addf %120, %109 : vector<2x32xf32>
    %122 = arith.negf %121 : vector<2x32xf32>
    %123 = math.exp %122 : vector<2x32xf32>
    %cst_64 = arith.constant 1.000000e+00 : f32
    %124 = vector.broadcast %cst_64 : f32 to vector<2x32xf32>
    %125 = arith.addf %124, %123 : vector<2x32xf32>
    %126 = arith.divf %124, %125 : vector<2x32xf32>
    %c6_65 = arith.constant 6 : index
    %c0_66 = arith.constant 0 : index
    %127 = vector.load %arg16[%c6_65, %c0_66] : memref<16x32xf32, #tpu.memory_space<vmem>>, vector<2x32xf32>
    %128 = arith.mulf %119, %112 : vector<2x32xf32>
    %129 = arith.addf %127, %128 : vector<2x32xf32>
    %130 = math.tanh %129 : vector<2x32xf32>
    %cst_67 = arith.constant 1.000000e+00 : f32
    %131 = vector.broadcast %cst_67 : f32 to vector<2x32xf32>
    %132 = arith.subf %131, %126 : vector<2x32xf32>
    %133 = arith.mulf %132, %130 : vector<2x32xf32>
    %134 = arith.mulf %126, %106 : vector<2x32xf32>
    %135 = arith.addf %133, %134 : vector<2x32xf32>
    %c6_68 = arith.constant 6 : index
    %c0_69 = arith.constant 0 : index
    %136 = vector.load %arg13[%c6_68, %c0_69] : memref<16x32xf32, #tpu.memory_space<vmem>>, vector<2x32xf32>
    tpu.vector_store %arg13[%c6_68, %c0_69], %135 {strides = array<i32>} : memref<16x32xf32, #tpu.memory_space<vmem>>, vector<2x32xf32>,
    %cst_70 = arith.constant dense<0.000000e+00> : vector<2x32xf32>
    %137 = tpu.matmul %135, %16, %cst_70 {dimension_numbers = #tpu.dot_dimension_numbers<[1], [0], [0], [1], [0, 0, 1, 1], [], []>} : vector<2x32xf32>, vector<32x32xf32>, vector<2x32xf32> -> vector<2x32xf32>
    %cst_71 = arith.constant dense<0.000000e+00> : vector<2x32xf32>
    %138 = tpu.matmul %135, %17, %cst_71 {dimension_numbers = #tpu.dot_dimension_numbers<[1], [0], [0], [1], [0, 0, 1, 1], [], []>} : vector<2x32xf32>, vector<32x32xf32>, vector<2x32xf32> -> vector<2x32xf32>
    %cst_72 = arith.constant dense<0.000000e+00> : vector<2x32xf32>
    %139 = tpu.matmul %135, %18, %cst_72 {dimension_numbers = #tpu.dot_dimension_numbers<[1], [0], [0], [1], [0, 0, 1, 1], [], []>} : vector<2x32xf32>, vector<32x32xf32>, vector<2x32xf32> -> vector<2x32xf32>
    %140 = vector.broadcast %19 : vector<1x32xf32> to vector<2x32xf32>
    %141 = arith.addf %139, %140 : vector<2x32xf32>
    %c8 = arith.constant 8 : index
    %c0_73 = arith.constant 0 : index
    %142 = vector.load %arg14[%c8, %c0_73] : memref<16x32xf32, #tpu.memory_space<vmem>>, vector<2x32xf32>
    %143 = arith.addf %142, %137 : vector<2x32xf32>
    %144 = arith.negf %143 : vector<2x32xf32>
    %145 = math.exp %144 : vector<2x32xf32>
    %cst_74 = arith.constant 1.000000e+00 : f32
    %146 = vector.broadcast %cst_74 : f32 to vector<2x32xf32>
    %147 = arith.addf %146, %145 : vector<2x32xf32>
    %148 = arith.divf %146, %147 : vector<2x32xf32>
    %c8_75 = arith.constant 8 : index
    %c0_76 = arith.constant 0 : index
    %149 = vector.load %arg15[%c8_75, %c0_76] : memref<16x32xf32, #tpu.memory_space<vmem>>, vector<2x32xf32>
    %150 = arith.addf %149, %138 : vector<2x32xf32>
    %151 = arith.negf %150 : vector<2x32xf32>
    %152 = math.exp %151 : vector<2x32xf32>
    %cst_77 = arith.constant 1.000000e+00 : f32
    %153 = vector.broadcast %cst_77 : f32 to vector<2x32xf32>
    %154 = arith.addf %153, %152 : vector<2x32xf32>
    %155 = arith.divf %153, %154 : vector<2x32xf32>
    %c8_78 = arith.constant 8 : index
    %c0_79 = arith.constant 0 : index
    %156 = vector.load %arg16[%c8_78, %c0_79] : memref<16x32xf32, #tpu.memory_space<vmem>>, vector<2x32xf32>
    %157 = arith.mulf %148, %141 : vector<2x32xf32>
    %158 = arith.addf %156, %157 : vector<2x32xf32>
    %159 = math.tanh %158 : vector<2x32xf32>
    %cst_80 = arith.constant 1.000000e+00 : f32
    %160 = vector.broadcast %cst_80 : f32 to vector<2x32xf32>
    %161 = arith.subf %160, %155 : vector<2x32xf32>
    %162 = arith.mulf %161, %159 : vector<2x32xf32>
    %163 = arith.mulf %155, %135 : vector<2x32xf32>
    %164 = arith.addf %162, %163 : vector<2x32xf32>
    %c8_81 = arith.constant 8 : index
    %c0_82 = arith.constant 0 : index
    %165 = vector.load %arg13[%c8_81, %c0_82] : memref<16x32xf32, #tpu.memory_space<vmem>>, vector<2x32xf32>
    tpu.vector_store %arg13[%c8_81, %c0_82], %164 {strides = array<i32>} : memref<16x32xf32, #tpu.memory_space<vmem>>, vector<2x32xf32>,
    %cst_83 = arith.constant dense<0.000000e+00> : vector<2x32xf32>
    %166 = tpu.matmul %164, %16, %cst_83 {dimension_numbers = #tpu.dot_dimension_numbers<[1], [0], [0], [1], [0, 0, 1, 1], [], []>} : vector<2x32xf32>, vector<32x32xf32>, vector<2x32xf32> -> vector<2x32xf32>
    %cst_84 = arith.constant dense<0.000000e+00> : vector<2x32xf32>
    %167 = tpu.matmul %164, %17, %cst_84 {dimension_numbers = #tpu.dot_dimension_numbers<[1], [0], [0], [1], [0, 0, 1, 1], [], []>} : vector<2x32xf32>, vector<32x32xf32>, vector<2x32xf32> -> vector<2x32xf32>
    %cst_85 = arith.constant dense<0.000000e+00> : vector<2x32xf32>
    %168 = tpu.matmul %164, %18, %cst_85 {dimension_numbers = #tpu.dot_dimension_numbers<[1], [0], [0], [1], [0, 0, 1, 1], [], []>} : vector<2x32xf32>, vector<32x32xf32>, vector<2x32xf32> -> vector<2x32xf32>
    %169 = vector.broadcast %19 : vector<1x32xf32> to vector<2x32xf32>
    %170 = arith.addf %168, %169 : vector<2x32xf32>
    %c10 = arith.constant 10 : index
    %c0_86 = arith.constant 0 : index
    %171 = vector.load %arg14[%c10, %c0_86] : memref<16x32xf32, #tpu.memory_space<vmem>>, vector<2x32xf32>
    %172 = arith.addf %171, %166 : vector<2x32xf32>
    %173 = arith.negf %172 : vector<2x32xf32>
    %174 = math.exp %173 : vector<2x32xf32>
    %cst_87 = arith.constant 1.000000e+00 : f32
    %175 = vector.broadcast %cst_87 : f32 to vector<2x32xf32>
    %176 = arith.addf %175, %174 : vector<2x32xf32>
    %177 = arith.divf %175, %176 : vector<2x32xf32>
    %c10_88 = arith.constant 10 : index
    %c0_89 = arith.constant 0 : index
    %178 = vector.load %arg15[%c10_88, %c0_89] : memref<16x32xf32, #tpu.memory_space<vmem>>, vector<2x32xf32>
    %179 = arith.addf %178, %167 : vector<2x32xf32>
    %180 = arith.negf %179 : vector<2x32xf32>
    %181 = math.exp %180 : vector<2x32xf32>
    %cst_90 = arith.constant 1.000000e+00 : f32
    %182 = vector.broadcast %cst_90 : f32 to vector<2x32xf32>
    %183 = arith.addf %182, %181 : vector<2x32xf32>
    %184 = arith.divf %182, %183 : vector<2x32xf32>
    %c10_91 = arith.constant 10 : index
    %c0_92 = arith.constant 0 : index
    %185 = vector.load %arg16[%c10_91, %c0_92] : memref<16x32xf32, #tpu.memory_space<vmem>>, vector<2x32xf32>
    %186 = arith.mulf %177, %170 : vector<2x32xf32>
    %187 = arith.addf %185, %186 : vector<2x32xf32>
    %188 = math.tanh %187 : vector<2x32xf32>
    %cst_93 = arith.constant 1.000000e+00 : f32
    %189 = vector.broadcast %cst_93 : f32 to vector<2x32xf32>
    %190 = arith.subf %189, %184 : vector<2x32xf32>
    %191 = arith.mulf %190, %188 : vector<2x32xf32>
    %192 = arith.mulf %184, %164 : vector<2x32xf32>
    %193 = arith.addf %191, %192 : vector<2x32xf32>
    %c10_94 = arith.constant 10 : index
    %c0_95 = arith.constant 0 : index
    %194 = vector.load %arg13[%c10_94, %c0_95] : memref<16x32xf32, #tpu.memory_space<vmem>>, vector<2x32xf32>
    tpu.vector_store %arg13[%c10_94, %c0_95], %193 {strides = array<i32>} : memref<16x32xf32, #tpu.memory_space<vmem>>, vector<2x32xf32>,
    %cst_96 = arith.constant dense<0.000000e+00> : vector<2x32xf32>
    %195 = tpu.matmul %193, %16, %cst_96 {dimension_numbers = #tpu.dot_dimension_numbers<[1], [0], [0], [1], [0, 0, 1, 1], [], []>} : vector<2x32xf32>, vector<32x32xf32>, vector<2x32xf32> -> vector<2x32xf32>
    %cst_97 = arith.constant dense<0.000000e+00> : vector<2x32xf32>
    %196 = tpu.matmul %193, %17, %cst_97 {dimension_numbers = #tpu.dot_dimension_numbers<[1], [0], [0], [1], [0, 0, 1, 1], [], []>} : vector<2x32xf32>, vector<32x32xf32>, vector<2x32xf32> -> vector<2x32xf32>
    %cst_98 = arith.constant dense<0.000000e+00> : vector<2x32xf32>
    %197 = tpu.matmul %193, %18, %cst_98 {dimension_numbers = #tpu.dot_dimension_numbers<[1], [0], [0], [1], [0, 0, 1, 1], [], []>} : vector<2x32xf32>, vector<32x32xf32>, vector<2x32xf32> -> vector<2x32xf32>
    %198 = vector.broadcast %19 : vector<1x32xf32> to vector<2x32xf32>
    %199 = arith.addf %197, %198 : vector<2x32xf32>
    %c12 = arith.constant 12 : index
    %c0_99 = arith.constant 0 : index
    %200 = vector.load %arg14[%c12, %c0_99] : memref<16x32xf32, #tpu.memory_space<vmem>>, vector<2x32xf32>
    %201 = arith.addf %200, %195 : vector<2x32xf32>
    %202 = arith.negf %201 : vector<2x32xf32>
    %203 = math.exp %202 : vector<2x32xf32>
    %cst_100 = arith.constant 1.000000e+00 : f32
    %204 = vector.broadcast %cst_100 : f32 to vector<2x32xf32>
    %205 = arith.addf %204, %203 : vector<2x32xf32>
    %206 = arith.divf %204, %205 : vector<2x32xf32>
    %c12_101 = arith.constant 12 : index
    %c0_102 = arith.constant 0 : index
    %207 = vector.load %arg15[%c12_101, %c0_102] : memref<16x32xf32, #tpu.memory_space<vmem>>, vector<2x32xf32>
    %208 = arith.addf %207, %196 : vector<2x32xf32>
    %209 = arith.negf %208 : vector<2x32xf32>
    %210 = math.exp %209 : vector<2x32xf32>
    %cst_103 = arith.constant 1.000000e+00 : f32
    %211 = vector.broadcast %cst_103 : f32 to vector<2x32xf32>
    %212 = arith.addf %211, %210 : vector<2x32xf32>
    %213 = arith.divf %211, %212 : vector<2x32xf32>
    %c12_104 = arith.constant 12 : index
    %c0_105 = arith.constant 0 : index
    %214 = vector.load %arg16[%c12_104, %c0_105] : memref<16x32xf32, #tpu.memory_space<vmem>>, vector<2x32xf32>
    %215 = arith.mulf %206, %199 : vector<2x32xf32>
    %216 = arith.addf %214, %215 : vector<2x32xf32>
    %217 = math.tanh %216 : vector<2x32xf32>
    %cst_106 = arith.constant 1.000000e+00 : f32
    %218 = vector.broadcast %cst_106 : f32 to vector<2x32xf32>
    %219 = arith.subf %218, %213 : vector<2x32xf32>
    %220 = arith.mulf %219, %217 : vector<2x32xf32>
    %221 = arith.mulf %213, %193 : vector<2x32xf32>
    %222 = arith.addf %220, %221 : vector<2x32xf32>
    %c12_107 = arith.constant 12 : index
    %c0_108 = arith.constant 0 : index
    %223 = vector.load %arg13[%c12_107, %c0_108] : memref<16x32xf32, #tpu.memory_space<vmem>>, vector<2x32xf32>
    tpu.vector_store %arg13[%c12_107, %c0_108], %222 {strides = array<i32>} : memref<16x32xf32, #tpu.memory_space<vmem>>, vector<2x32xf32>,
    %cst_109 = arith.constant dense<0.000000e+00> : vector<2x32xf32>
    %224 = tpu.matmul %222, %16, %cst_109 {dimension_numbers = #tpu.dot_dimension_numbers<[1], [0], [0], [1], [0, 0, 1, 1], [], []>} : vector<2x32xf32>, vector<32x32xf32>, vector<2x32xf32> -> vector<2x32xf32>
    %cst_110 = arith.constant dense<0.000000e+00> : vector<2x32xf32>
    %225 = tpu.matmul %222, %17, %cst_110 {dimension_numbers = #tpu.dot_dimension_numbers<[1], [0], [0], [1], [0, 0, 1, 1], [], []>} : vector<2x32xf32>, vector<32x32xf32>, vector<2x32xf32> -> vector<2x32xf32>
    %cst_111 = arith.constant dense<0.000000e+00> : vector<2x32xf32>
    %226 = tpu.matmul %222, %18, %cst_111 {dimension_numbers = #tpu.dot_dimension_numbers<[1], [0], [0], [1], [0, 0, 1, 1], [], []>} : vector<2x32xf32>, vector<32x32xf32>, vector<2x32xf32> -> vector<2x32xf32>
    %227 = vector.broadcast %19 : vector<1x32xf32> to vector<2x32xf32>
    %228 = arith.addf %226, %227 : vector<2x32xf32>
    %c14 = arith.constant 14 : index
    %c0_112 = arith.constant 0 : index
    %229 = vector.load %arg14[%c14, %c0_112] : memref<16x32xf32, #tpu.memory_space<vmem>>, vector<2x32xf32>
    %230 = arith.addf %229, %224 : vector<2x32xf32>
    %231 = arith.negf %230 : vector<2x32xf32>
    %232 = math.exp %231 : vector<2x32xf32>
    %cst_113 = arith.constant 1.000000e+00 : f32
    %233 = vector.broadcast %cst_113 : f32 to vector<2x32xf32>
    %234 = arith.addf %233, %232 : vector<2x32xf32>
    %235 = arith.divf %233, %234 : vector<2x32xf32>
    %c14_114 = arith.constant 14 : index
    %c0_115 = arith.constant 0 : index
    %236 = vector.load %arg15[%c14_114, %c0_115] : memref<16x32xf32, #tpu.memory_space<vmem>>, vector<2x32xf32>
    %237 = arith.addf %236, %225 : vector<2x32xf32>
    %238 = arith.negf %237 : vector<2x32xf32>
    %239 = math.exp %238 : vector<2x32xf32>
    %cst_116 = arith.constant 1.000000e+00 : f32
    %240 = vector.broadcast %cst_116 : f32 to vector<2x32xf32>
    %241 = arith.addf %240, %239 : vector<2x32xf32>
    %242 = arith.divf %240, %241 : vector<2x32xf32>
    %c14_117 = arith.constant 14 : index
    %c0_118 = arith.constant 0 : index
    %243 = vector.load %arg16[%c14_117, %c0_118] : memref<16x32xf32, #tpu.memory_space<vmem>>, vector<2x32xf32>
    %244 = arith.mulf %235, %228 : vector<2x32xf32>
    %245 = arith.addf %243, %244 : vector<2x32xf32>
    %246 = math.tanh %245 : vector<2x32xf32>
    %cst_119 = arith.constant 1.000000e+00 : f32
    %247 = vector.broadcast %cst_119 : f32 to vector<2x32xf32>
    %248 = arith.subf %247, %242 : vector<2x32xf32>
    %249 = arith.mulf %248, %246 : vector<2x32xf32>
    %250 = arith.mulf %242, %222 : vector<2x32xf32>
    %251 = arith.addf %249, %250 : vector<2x32xf32>
    %c14_120 = arith.constant 14 : index
    %c0_121 = arith.constant 0 : index
    %252 = vector.load %arg13[%c14_120, %c0_121] : memref<16x32xf32, #tpu.memory_space<vmem>>, vector<2x32xf32>
    tpu.vector_store %arg13[%c14_120, %c0_121], %251 {strides = array<i32>} : memref<16x32xf32, #tpu.memory_space<vmem>>, vector<2x32xf32>,
    %c0_122 = arith.constant 0 : index
    %c0_123 = arith.constant 0 : index
    %c0_124 = arith.constant 0 : index
    %253 = vector.load %arg12[%c0_122, %c0_123, %c0_124] : memref<2x2x32xf32, #tpu.memory_space<vmem>>, vector<1x2x32xf32>
    %254 = vector.shape_cast %253 : vector<1x2x32xf32> to vector<2x32xf32>
    %255 = vector.shape_cast %251 : vector<2x32xf32> to vector<1x2x32xf32>
    tpu.vector_store %arg12[%c0_122, %c0_123, %c0_124], %255 {strides = array<i32>} : memref<2x2x32xf32, #tpu.memory_space<vmem>>, vector<1x2x32xf32>,
    %c0_125 = arith.constant 0 : index
    %c0_126 = arith.constant 0 : index
    %256 = vector.load %arg13[%c0_125, %c0_126] : memref<16x32xf32, #tpu.memory_space<vmem>>, vector<16x32xf32>
    %c0_127 = arith.constant 0 : index
    %c0_128 = arith.constant 0 : index
    %257 = vector.load %arg5[%c0_127, %c0_128] : memref<32x96xbf16, #tpu.memory_space<vmem>>, vector<32x96xbf16>
    %258 = arith.extf %257 : vector<32x96xbf16> to vector<32x96xf32>
    %cst_129 = arith.constant dense<0.000000e+00> : vector<16x96xf32>
    %259 = tpu.matmul %256, %258, %cst_129 {dimension_numbers = #tpu.dot_dimension_numbers<[1], [0], [0], [1], [0, 0, 1, 1], [], []>} : vector<16x32xf32>, vector<32x96xf32>, vector<16x96xf32> -> vector<16x96xf32>
    %c0_130 = arith.constant 0 : index
    %c0_131 = arith.constant 0 : index
    %260 = vector.load %arg7[%c0_130, %c0_131] : memref<1x96xf32, #tpu.memory_space<vmem>>, vector<1x96xf32>
    %261 = vector.broadcast %260 : vector<1x96xf32> to vector<16x96xf32>
    %262 = arith.addf %259, %261 : vector<16x96xf32>
    %263 = vector.extract_strided_slice %262 {offsets = [0, 0], sizes = [16, 32], strides = [1, 1]} : vector<16x96xf32> to vector<16x32xf32>
    %c0_132 = arith.constant 0 : index
    %c0_133 = arith.constant 0 : index
    %264 = vector.load %arg14[%c0_132, %c0_133] : memref<16x32xf32, #tpu.memory_space<vmem>>, vector<16x32xf32>
    tpu.vector_store %arg14[%c0_132, %c0_133], %263 {strides = array<i32>} : memref<16x32xf32, #tpu.memory_space<vmem>>, vector<16x32xf32>,
    %265 = vector.extract_strided_slice %262 {offsets = [0, 32], sizes = [16, 32], strides = [1, 1]} : vector<16x96xf32> to vector<16x32xf32>
    %c0_134 = arith.constant 0 : index
    %c0_135 = arith.constant 0 : index
    %266 = vector.load %arg15[%c0_134, %c0_135] : memref<16x32xf32, #tpu.memory_space<vmem>>, vector<16x32xf32>
    tpu.vector_store %arg15[%c0_134, %c0_135], %265 {strides = array<i32>} : memref<16x32xf32, #tpu.memory_space<vmem>>, vector<16x32xf32>,
    %267 = vector.extract_strided_slice %262 {offsets = [0, 64], sizes = [16, 32], strides = [1, 1]} : vector<16x96xf32> to vector<16x32xf32>
    %c0_136 = arith.constant 0 : index
    %c0_137 = arith.constant 0 : index
    %268 = vector.load %arg16[%c0_136, %c0_137] : memref<16x32xf32, #tpu.memory_space<vmem>>, vector<16x32xf32>
    tpu.vector_store %arg16[%c0_136, %c0_137], %267 {strides = array<i32>} : memref<16x32xf32, #tpu.memory_space<vmem>>, vector<16x32xf32>,
    %c0_138 = arith.constant 0 : index
    %c0_139 = arith.constant 0 : index
    %269 = vector.load %arg6[%c0_138, %c0_139] : memref<32x96xbf16, #tpu.memory_space<vmem>>, vector<32x96xbf16>
    %270 = arith.extf %269 : vector<32x96xbf16> to vector<32x96xf32>
    %271 = vector.extract_strided_slice %270 {offsets = [0, 0], sizes = [32, 32], strides = [1, 1]} : vector<32x96xf32> to vector<32x32xf32>
    %272 = vector.extract_strided_slice %270 {offsets = [0, 32], sizes = [32, 32], strides = [1, 1]} : vector<32x96xf32> to vector<32x32xf32>
    %273 = vector.extract_strided_slice %270 {offsets = [0, 64], sizes = [32, 32], strides = [1, 1]} : vector<32x96xf32> to vector<32x32xf32>
    %c0_140 = arith.constant 0 : index
    %c0_141 = arith.constant 0 : index
    %274 = vector.load %arg8[%c0_140, %c0_141] : memref<1x32xf32, #tpu.memory_space<vmem>>, vector<1x32xf32>
    %cst_142 = arith.constant 0.000000e+00 : f32
    %275 = vector.broadcast %cst_142 : f32 to vector<2x32xf32>
    %cst_143 = arith.constant dense<0.000000e+00> : vector<2x32xf32>
    %276 = tpu.matmul %275, %271, %cst_143 {dimension_numbers = #tpu.dot_dimension_numbers<[1], [0], [0], [1], [0, 0, 1, 1], [], []>} : vector<2x32xf32>, vector<32x32xf32>, vector<2x32xf32> -> vector<2x32xf32>
    %cst_144 = arith.constant dense<0.000000e+00> : vector<2x32xf32>
    %277 = tpu.matmul %275, %272, %cst_144 {dimension_numbers = #tpu.dot_dimension_numbers<[1], [0], [0], [1], [0, 0, 1, 1], [], []>} : vector<2x32xf32>, vector<32x32xf32>, vector<2x32xf32> -> vector<2x32xf32>
    %cst_145 = arith.constant dense<0.000000e+00> : vector<2x32xf32>
    %278 = tpu.matmul %275, %273, %cst_145 {dimension_numbers = #tpu.dot_dimension_numbers<[1], [0], [0], [1], [0, 0, 1, 1], [], []>} : vector<2x32xf32>, vector<32x32xf32>, vector<2x32xf32> -> vector<2x32xf32>
    %279 = vector.broadcast %274 : vector<1x32xf32> to vector<2x32xf32>
    %280 = arith.addf %278, %279 : vector<2x32xf32>
    %c0_146 = arith.constant 0 : index
    %c0_147 = arith.constant 0 : index
    %281 = vector.load %arg14[%c0_146, %c0_147] : memref<16x32xf32, #tpu.memory_space<vmem>>, vector<2x32xf32>
    %282 = arith.addf %281, %276 : vector<2x32xf32>
    %283 = arith.negf %282 : vector<2x32xf32>
    %284 = math.exp %283 : vector<2x32xf32>
    %cst_148 = arith.constant 1.000000e+00 : f32
    %285 = vector.broadcast %cst_148 : f32 to vector<2x32xf32>
    %286 = arith.addf %285, %284 : vector<2x32xf32>
    %287 = arith.divf %285, %286 : vector<2x32xf32>
    %c0_149 = arith.constant 0 : index
    %c0_150 = arith.constant 0 : index
    %288 = vector.load %arg15[%c0_149, %c0_150] : memref<16x32xf32, #tpu.memory_space<vmem>>, vector<2x32xf32>
    %289 = arith.addf %288, %277 : vector<2x32xf32>
    %290 = arith.negf %289 : vector<2x32xf32>
    %291 = math.exp %290 : vector<2x32xf32>
    %cst_151 = arith.constant 1.000000e+00 : f32
    %292 = vector.broadcast %cst_151 : f32 to vector<2x32xf32>
    %293 = arith.addf %292, %291 : vector<2x32xf32>
    %294 = arith.divf %292, %293 : vector<2x32xf32>
    %c0_152 = arith.constant 0 : index
    %c0_153 = arith.constant 0 : index
    %295 = vector.load %arg16[%c0_152, %c0_153] : memref<16x32xf32, #tpu.memory_space<vmem>>, vector<2x32xf32>
    %296 = arith.mulf %287, %280 : vector<2x32xf32>
    %297 = arith.addf %295, %296 : vector<2x32xf32>
    %298 = math.tanh %297 : vector<2x32xf32>
    %cst_154 = arith.constant 1.000000e+00 : f32
    %299 = vector.broadcast %cst_154 : f32 to vector<2x32xf32>
    %300 = arith.subf %299, %294 : vector<2x32xf32>
    %301 = arith.mulf %300, %298 : vector<2x32xf32>
    %302 = arith.mulf %294, %275 : vector<2x32xf32>
    %303 = arith.addf %301, %302 : vector<2x32xf32>
    %c0_155 = arith.constant 0 : index
    %c0_156 = arith.constant 0 : index
    %304 = vector.load %arg13[%c0_155, %c0_156] : memref<16x32xf32, #tpu.memory_space<vmem>>, vector<2x32xf32>
    tpu.vector_store %arg13[%c0_155, %c0_156], %303 {strides = array<i32>} : memref<16x32xf32, #tpu.memory_space<vmem>>, vector<2x32xf32>,
    %cst_157 = arith.constant dense<0.000000e+00> : vector<2x32xf32>
    %305 = tpu.matmul %303, %271, %cst_157 {dimension_numbers = #tpu.dot_dimension_numbers<[1], [0], [0], [1], [0, 0, 1, 1], [], []>} : vector<2x32xf32>, vector<32x32xf32>, vector<2x32xf32> -> vector<2x32xf32>
    %cst_158 = arith.constant dense<0.000000e+00> : vector<2x32xf32>
    %306 = tpu.matmul %303, %272, %cst_158 {dimension_numbers = #tpu.dot_dimension_numbers<[1], [0], [0], [1], [0, 0, 1, 1], [], []>} : vector<2x32xf32>, vector<32x32xf32>, vector<2x32xf32> -> vector<2x32xf32>
    %cst_159 = arith.constant dense<0.000000e+00> : vector<2x32xf32>
    %307 = tpu.matmul %303, %273, %cst_159 {dimension_numbers = #tpu.dot_dimension_numbers<[1], [0], [0], [1], [0, 0, 1, 1], [], []>} : vector<2x32xf32>, vector<32x32xf32>, vector<2x32xf32> -> vector<2x32xf32>
    %308 = vector.broadcast %274 : vector<1x32xf32> to vector<2x32xf32>
    %309 = arith.addf %307, %308 : vector<2x32xf32>
    %c2_160 = arith.constant 2 : index
    %c0_161 = arith.constant 0 : index
    %310 = vector.load %arg14[%c2_160, %c0_161] : memref<16x32xf32, #tpu.memory_space<vmem>>, vector<2x32xf32>
    %311 = arith.addf %310, %305 : vector<2x32xf32>
    %312 = arith.negf %311 : vector<2x32xf32>
    %313 = math.exp %312 : vector<2x32xf32>
    %cst_162 = arith.constant 1.000000e+00 : f32
    %314 = vector.broadcast %cst_162 : f32 to vector<2x32xf32>
    %315 = arith.addf %314, %313 : vector<2x32xf32>
    %316 = arith.divf %314, %315 : vector<2x32xf32>
    %c2_163 = arith.constant 2 : index
    %c0_164 = arith.constant 0 : index
    %317 = vector.load %arg15[%c2_163, %c0_164] : memref<16x32xf32, #tpu.memory_space<vmem>>, vector<2x32xf32>
    %318 = arith.addf %317, %306 : vector<2x32xf32>
    %319 = arith.negf %318 : vector<2x32xf32>
    %320 = math.exp %319 : vector<2x32xf32>
    %cst_165 = arith.constant 1.000000e+00 : f32
    %321 = vector.broadcast %cst_165 : f32 to vector<2x32xf32>
    %322 = arith.addf %321, %320 : vector<2x32xf32>
    %323 = arith.divf %321, %322 : vector<2x32xf32>
    %c2_166 = arith.constant 2 : index
    %c0_167 = arith.constant 0 : index
    %324 = vector.load %arg16[%c2_166, %c0_167] : memref<16x32xf32, #tpu.memory_space<vmem>>, vector<2x32xf32>
    %325 = arith.mulf %316, %309 : vector<2x32xf32>
    %326 = arith.addf %324, %325 : vector<2x32xf32>
    %327 = math.tanh %326 : vector<2x32xf32>
    %cst_168 = arith.constant 1.000000e+00 : f32
    %328 = vector.broadcast %cst_168 : f32 to vector<2x32xf32>
    %329 = arith.subf %328, %323 : vector<2x32xf32>
    %330 = arith.mulf %329, %327 : vector<2x32xf32>
    %331 = arith.mulf %323, %303 : vector<2x32xf32>
    %332 = arith.addf %330, %331 : vector<2x32xf32>
    %c2_169 = arith.constant 2 : index
    %c0_170 = arith.constant 0 : index
    %333 = vector.load %arg13[%c2_169, %c0_170] : memref<16x32xf32, #tpu.memory_space<vmem>>, vector<2x32xf32>
    tpu.vector_store %arg13[%c2_169, %c0_170], %332 {strides = array<i32>} : memref<16x32xf32, #tpu.memory_space<vmem>>, vector<2x32xf32>,
    %cst_171 = arith.constant dense<0.000000e+00> : vector<2x32xf32>
    %334 = tpu.matmul %332, %271, %cst_171 {dimension_numbers = #tpu.dot_dimension_numbers<[1], [0], [0], [1], [0, 0, 1, 1], [], []>} : vector<2x32xf32>, vector<32x32xf32>, vector<2x32xf32> -> vector<2x32xf32>
    %cst_172 = arith.constant dense<0.000000e+00> : vector<2x32xf32>
    %335 = tpu.matmul %332, %272, %cst_172 {dimension_numbers = #tpu.dot_dimension_numbers<[1], [0], [0], [1], [0, 0, 1, 1], [], []>} : vector<2x32xf32>, vector<32x32xf32>, vector<2x32xf32> -> vector<2x32xf32>
    %cst_173 = arith.constant dense<0.000000e+00> : vector<2x32xf32>
    %336 = tpu.matmul %332, %273, %cst_173 {dimension_numbers = #tpu.dot_dimension_numbers<[1], [0], [0], [1], [0, 0, 1, 1], [], []>} : vector<2x32xf32>, vector<32x32xf32>, vector<2x32xf32> -> vector<2x32xf32>
    %337 = vector.broadcast %274 : vector<1x32xf32> to vector<2x32xf32>
    %338 = arith.addf %336, %337 : vector<2x32xf32>
    %c4_174 = arith.constant 4 : index
    %c0_175 = arith.constant 0 : index
    %339 = vector.load %arg14[%c4_174, %c0_175] : memref<16x32xf32, #tpu.memory_space<vmem>>, vector<2x32xf32>
    %340 = arith.addf %339, %334 : vector<2x32xf32>
    %341 = arith.negf %340 : vector<2x32xf32>
    %342 = math.exp %341 : vector<2x32xf32>
    %cst_176 = arith.constant 1.000000e+00 : f32
    %343 = vector.broadcast %cst_176 : f32 to vector<2x32xf32>
    %344 = arith.addf %343, %342 : vector<2x32xf32>
    %345 = arith.divf %343, %344 : vector<2x32xf32>
    %c4_177 = arith.constant 4 : index
    %c0_178 = arith.constant 0 : index
    %346 = vector.load %arg15[%c4_177, %c0_178] : memref<16x32xf32, #tpu.memory_space<vmem>>, vector<2x32xf32>
    %347 = arith.addf %346, %335 : vector<2x32xf32>
    %348 = arith.negf %347 : vector<2x32xf32>
    %349 = math.exp %348 : vector<2x32xf32>
    %cst_179 = arith.constant 1.000000e+00 : f32
    %350 = vector.broadcast %cst_179 : f32 to vector<2x32xf32>
    %351 = arith.addf %350, %349 : vector<2x32xf32>
    %352 = arith.divf %350, %351 : vector<2x32xf32>
    %c4_180 = arith.constant 4 : index
    %c0_181 = arith.constant 0 : index
    %353 = vector.load %arg16[%c4_180, %c0_181] : memref<16x32xf32, #tpu.memory_space<vmem>>, vector<2x32xf32>
    %354 = arith.mulf %345, %338 : vector<2x32xf32>
    %355 = arith.addf %353, %354 : vector<2x32xf32>
    %356 = math.tanh %355 : vector<2x32xf32>
    %cst_182 = arith.constant 1.000000e+00 : f32
    %357 = vector.broadcast %cst_182 : f32 to vector<2x32xf32>
    %358 = arith.subf %357, %352 : vector<2x32xf32>
    %359 = arith.mulf %358, %356 : vector<2x32xf32>
    %360 = arith.mulf %352, %332 : vector<2x32xf32>
    %361 = arith.addf %359, %360 : vector<2x32xf32>
    %c4_183 = arith.constant 4 : index
    %c0_184 = arith.constant 0 : index
    %362 = vector.load %arg13[%c4_183, %c0_184] : memref<16x32xf32, #tpu.memory_space<vmem>>, vector<2x32xf32>
    tpu.vector_store %arg13[%c4_183, %c0_184], %361 {strides = array<i32>} : memref<16x32xf32, #tpu.memory_space<vmem>>, vector<2x32xf32>,
    %cst_185 = arith.constant dense<0.000000e+00> : vector<2x32xf32>
    %363 = tpu.matmul %361, %271, %cst_185 {dimension_numbers = #tpu.dot_dimension_numbers<[1], [0], [0], [1], [0, 0, 1, 1], [], []>} : vector<2x32xf32>, vector<32x32xf32>, vector<2x32xf32> -> vector<2x32xf32>
    %cst_186 = arith.constant dense<0.000000e+00> : vector<2x32xf32>
    %364 = tpu.matmul %361, %272, %cst_186 {dimension_numbers = #tpu.dot_dimension_numbers<[1], [0], [0], [1], [0, 0, 1, 1], [], []>} : vector<2x32xf32>, vector<32x32xf32>, vector<2x32xf32> -> vector<2x32xf32>
    %cst_187 = arith.constant dense<0.000000e+00> : vector<2x32xf32>
    %365 = tpu.matmul %361, %273, %cst_187 {dimension_numbers = #tpu.dot_dimension_numbers<[1], [0], [0], [1], [0, 0, 1, 1], [], []>} : vector<2x32xf32>, vector<32x32xf32>, vector<2x32xf32> -> vector<2x32xf32>
    %366 = vector.broadcast %274 : vector<1x32xf32> to vector<2x32xf32>
    %367 = arith.addf %365, %366 : vector<2x32xf32>
    %c6_188 = arith.constant 6 : index
    %c0_189 = arith.constant 0 : index
    %368 = vector.load %arg14[%c6_188, %c0_189] : memref<16x32xf32, #tpu.memory_space<vmem>>, vector<2x32xf32>
    %369 = arith.addf %368, %363 : vector<2x32xf32>
    %370 = arith.negf %369 : vector<2x32xf32>
    %371 = math.exp %370 : vector<2x32xf32>
    %cst_190 = arith.constant 1.000000e+00 : f32
    %372 = vector.broadcast %cst_190 : f32 to vector<2x32xf32>
    %373 = arith.addf %372, %371 : vector<2x32xf32>
    %374 = arith.divf %372, %373 : vector<2x32xf32>
    %c6_191 = arith.constant 6 : index
    %c0_192 = arith.constant 0 : index
    %375 = vector.load %arg15[%c6_191, %c0_192] : memref<16x32xf32, #tpu.memory_space<vmem>>, vector<2x32xf32>
    %376 = arith.addf %375, %364 : vector<2x32xf32>
    %377 = arith.negf %376 : vector<2x32xf32>
    %378 = math.exp %377 : vector<2x32xf32>
    %cst_193 = arith.constant 1.000000e+00 : f32
    %379 = vector.broadcast %cst_193 : f32 to vector<2x32xf32>
    %380 = arith.addf %379, %378 : vector<2x32xf32>
    %381 = arith.divf %379, %380 : vector<2x32xf32>
    %c6_194 = arith.constant 6 : index
    %c0_195 = arith.constant 0 : index
    %382 = vector.load %arg16[%c6_194, %c0_195] : memref<16x32xf32, #tpu.memory_space<vmem>>, vector<2x32xf32>
    %383 = arith.mulf %374, %367 : vector<2x32xf32>
    %384 = arith.addf %382, %383 : vector<2x32xf32>
    %385 = math.tanh %384 : vector<2x32xf32>
    %cst_196 = arith.constant 1.000000e+00 : f32
    %386 = vector.broadcast %cst_196 : f32 to vector<2x32xf32>
    %387 = arith.subf %386, %381 : vector<2x32xf32>
    %388 = arith.mulf %387, %385 : vector<2x32xf32>
    %389 = arith.mulf %381, %361 : vector<2x32xf32>
    %390 = arith.addf %388, %389 : vector<2x32xf32>
    %c6_197 = arith.constant 6 : index
    %c0_198 = arith.constant 0 : index
    %391 = vector.load %arg13[%c6_197, %c0_198] : memref<16x32xf32, #tpu.memory_space<vmem>>, vector<2x32xf32>
    tpu.vector_store %arg13[%c6_197, %c0_198], %390 {strides = array<i32>} : memref<16x32xf32, #tpu.memory_space<vmem>>, vector<2x32xf32>,
    %cst_199 = arith.constant dense<0.000000e+00> : vector<2x32xf32>
    %392 = tpu.matmul %390, %271, %cst_199 {dimension_numbers = #tpu.dot_dimension_numbers<[1], [0], [0], [1], [0, 0, 1, 1], [], []>} : vector<2x32xf32>, vector<32x32xf32>, vector<2x32xf32> -> vector<2x32xf32>
    %cst_200 = arith.constant dense<0.000000e+00> : vector<2x32xf32>
    %393 = tpu.matmul %390, %272, %cst_200 {dimension_numbers = #tpu.dot_dimension_numbers<[1], [0], [0], [1], [0, 0, 1, 1], [], []>} : vector<2x32xf32>, vector<32x32xf32>, vector<2x32xf32> -> vector<2x32xf32>
    %cst_201 = arith.constant dense<0.000000e+00> : vector<2x32xf32>
    %394 = tpu.matmul %390, %273, %cst_201 {dimension_numbers = #tpu.dot_dimension_numbers<[1], [0], [0], [1], [0, 0, 1, 1], [], []>} : vector<2x32xf32>, vector<32x32xf32>, vector<2x32xf32> -> vector<2x32xf32>
    %395 = vector.broadcast %274 : vector<1x32xf32> to vector<2x32xf32>
    %396 = arith.addf %394, %395 : vector<2x32xf32>
    %c8_202 = arith.constant 8 : index
    %c0_203 = arith.constant 0 : index
    %397 = vector.load %arg14[%c8_202, %c0_203] : memref<16x32xf32, #tpu.memory_space<vmem>>, vector<2x32xf32>
    %398 = arith.addf %397, %392 : vector<2x32xf32>
    %399 = arith.negf %398 : vector<2x32xf32>
    %400 = math.exp %399 : vector<2x32xf32>
    %cst_204 = arith.constant 1.000000e+00 : f32
    %401 = vector.broadcast %cst_204 : f32 to vector<2x32xf32>
    %402 = arith.addf %401, %400 : vector<2x32xf32>
    %403 = arith.divf %401, %402 : vector<2x32xf32>
    %c8_205 = arith.constant 8 : index
    %c0_206 = arith.constant 0 : index
    %404 = vector.load %arg15[%c8_205, %c0_206] : memref<16x32xf32, #tpu.memory_space<vmem>>, vector<2x32xf32>
    %405 = arith.addf %404, %393 : vector<2x32xf32>
    %406 = arith.negf %405 : vector<2x32xf32>
    %407 = math.exp %406 : vector<2x32xf32>
    %cst_207 = arith.constant 1.000000e+00 : f32
    %408 = vector.broadcast %cst_207 : f32 to vector<2x32xf32>
    %409 = arith.addf %408, %407 : vector<2x32xf32>
    %410 = arith.divf %408, %409 : vector<2x32xf32>
    %c8_208 = arith.constant 8 : index
    %c0_209 = arith.constant 0 : index
    %411 = vector.load %arg16[%c8_208, %c0_209] : memref<16x32xf32, #tpu.memory_space<vmem>>, vector<2x32xf32>
    %412 = arith.mulf %403, %396 : vector<2x32xf32>
    %413 = arith.addf %411, %412 : vector<2x32xf32>
    %414 = math.tanh %413 : vector<2x32xf32>
    %cst_210 = arith.constant 1.000000e+00 : f32
    %415 = vector.broadcast %cst_210 : f32 to vector<2x32xf32>
    %416 = arith.subf %415, %410 : vector<2x32xf32>
    %417 = arith.mulf %416, %414 : vector<2x32xf32>
    %418 = arith.mulf %410, %390 : vector<2x32xf32>
    %419 = arith.addf %417, %418 : vector<2x32xf32>
    %c8_211 = arith.constant 8 : index
    %c0_212 = arith.constant 0 : index
    %420 = vector.load %arg13[%c8_211, %c0_212] : memref<16x32xf32, #tpu.memory_space<vmem>>, vector<2x32xf32>
    tpu.vector_store %arg13[%c8_211, %c0_212], %419 {strides = array<i32>} : memref<16x32xf32, #tpu.memory_space<vmem>>, vector<2x32xf32>,
    %cst_213 = arith.constant dense<0.000000e+00> : vector<2x32xf32>
    %421 = tpu.matmul %419, %271, %cst_213 {dimension_numbers = #tpu.dot_dimension_numbers<[1], [0], [0], [1], [0, 0, 1, 1], [], []>} : vector<2x32xf32>, vector<32x32xf32>, vector<2x32xf32> -> vector<2x32xf32>
    %cst_214 = arith.constant dense<0.000000e+00> : vector<2x32xf32>
    %422 = tpu.matmul %419, %272, %cst_214 {dimension_numbers = #tpu.dot_dimension_numbers<[1], [0], [0], [1], [0, 0, 1, 1], [], []>} : vector<2x32xf32>, vector<32x32xf32>, vector<2x32xf32> -> vector<2x32xf32>
    %cst_215 = arith.constant dense<0.000000e+00> : vector<2x32xf32>
    %423 = tpu.matmul %419, %273, %cst_215 {dimension_numbers = #tpu.dot_dimension_numbers<[1], [0], [0], [1], [0, 0, 1, 1], [], []>} : vector<2x32xf32>, vector<32x32xf32>, vector<2x32xf32> -> vector<2x32xf32>
    %424 = vector.broadcast %274 : vector<1x32xf32> to vector<2x32xf32>
    %425 = arith.addf %423, %424 : vector<2x32xf32>
    %c10_216 = arith.constant 10 : index
    %c0_217 = arith.constant 0 : index
    %426 = vector.load %arg14[%c10_216, %c0_217] : memref<16x32xf32, #tpu.memory_space<vmem>>, vector<2x32xf32>
    %427 = arith.addf %426, %421 : vector<2x32xf32>
    %428 = arith.negf %427 : vector<2x32xf32>
    %429 = math.exp %428 : vector<2x32xf32>
    %cst_218 = arith.constant 1.000000e+00 : f32
    %430 = vector.broadcast %cst_218 : f32 to vector<2x32xf32>
    %431 = arith.addf %430, %429 : vector<2x32xf32>
    %432 = arith.divf %430, %431 : vector<2x32xf32>
    %c10_219 = arith.constant 10 : index
    %c0_220 = arith.constant 0 : index
    %433 = vector.load %arg15[%c10_219, %c0_220] : memref<16x32xf32, #tpu.memory_space<vmem>>, vector<2x32xf32>
    %434 = arith.addf %433, %422 : vector<2x32xf32>
    %435 = arith.negf %434 : vector<2x32xf32>
    %436 = math.exp %435 : vector<2x32xf32>
    %cst_221 = arith.constant 1.000000e+00 : f32
    %437 = vector.broadcast %cst_221 : f32 to vector<2x32xf32>
    %438 = arith.addf %437, %436 : vector<2x32xf32>
    %439 = arith.divf %437, %438 : vector<2x32xf32>
    %c10_222 = arith.constant 10 : index
    %c0_223 = arith.constant 0 : index
    %440 = vector.load %arg16[%c10_222, %c0_223] : memref<16x32xf32, #tpu.memory_space<vmem>>, vector<2x32xf32>
    %441 = arith.mulf %432, %425 : vector<2x32xf32>
    %442 = arith.addf %440, %441 : vector<2x32xf32>
    %443 = math.tanh %442 : vector<2x32xf32>
    %cst_224 = arith.constant 1.000000e+00 : f32
    %444 = vector.broadcast %cst_224 : f32 to vector<2x32xf32>
    %445 = arith.subf %444, %439 : vector<2x32xf32>
    %446 = arith.mulf %445, %443 : vector<2x32xf32>
    %447 = arith.mulf %439, %419 : vector<2x32xf32>
    %448 = arith.addf %446, %447 : vector<2x32xf32>
    %c10_225 = arith.constant 10 : index
    %c0_226 = arith.constant 0 : index
    %449 = vector.load %arg13[%c10_225, %c0_226] : memref<16x32xf32, #tpu.memory_space<vmem>>, vector<2x32xf32>
    tpu.vector_store %arg13[%c10_225, %c0_226], %448 {strides = array<i32>} : memref<16x32xf32, #tpu.memory_space<vmem>>, vector<2x32xf32>,
    %cst_227 = arith.constant dense<0.000000e+00> : vector<2x32xf32>
    %450 = tpu.matmul %448, %271, %cst_227 {dimension_numbers = #tpu.dot_dimension_numbers<[1], [0], [0], [1], [0, 0, 1, 1], [], []>} : vector<2x32xf32>, vector<32x32xf32>, vector<2x32xf32> -> vector<2x32xf32>
    %cst_228 = arith.constant dense<0.000000e+00> : vector<2x32xf32>
    %451 = tpu.matmul %448, %272, %cst_228 {dimension_numbers = #tpu.dot_dimension_numbers<[1], [0], [0], [1], [0, 0, 1, 1], [], []>} : vector<2x32xf32>, vector<32x32xf32>, vector<2x32xf32> -> vector<2x32xf32>
    %cst_229 = arith.constant dense<0.000000e+00> : vector<2x32xf32>
    %452 = tpu.matmul %448, %273, %cst_229 {dimension_numbers = #tpu.dot_dimension_numbers<[1], [0], [0], [1], [0, 0, 1, 1], [], []>} : vector<2x32xf32>, vector<32x32xf32>, vector<2x32xf32> -> vector<2x32xf32>
    %453 = vector.broadcast %274 : vector<1x32xf32> to vector<2x32xf32>
    %454 = arith.addf %452, %453 : vector<2x32xf32>
    %c12_230 = arith.constant 12 : index
    %c0_231 = arith.constant 0 : index
    %455 = vector.load %arg14[%c12_230, %c0_231] : memref<16x32xf32, #tpu.memory_space<vmem>>, vector<2x32xf32>
    %456 = arith.addf %455, %450 : vector<2x32xf32>
    %457 = arith.negf %456 : vector<2x32xf32>
    %458 = math.exp %457 : vector<2x32xf32>
    %cst_232 = arith.constant 1.000000e+00 : f32
    %459 = vector.broadcast %cst_232 : f32 to vector<2x32xf32>
    %460 = arith.addf %459, %458 : vector<2x32xf32>
    %461 = arith.divf %459, %460 : vector<2x32xf32>
    %c12_233 = arith.constant 12 : index
    %c0_234 = arith.constant 0 : index
    %462 = vector.load %arg15[%c12_233, %c0_234] : memref<16x32xf32, #tpu.memory_space<vmem>>, vector<2x32xf32>
    %463 = arith.addf %462, %451 : vector<2x32xf32>
    %464 = arith.negf %463 : vector<2x32xf32>
    %465 = math.exp %464 : vector<2x32xf32>
    %cst_235 = arith.constant 1.000000e+00 : f32
    %466 = vector.broadcast %cst_235 : f32 to vector<2x32xf32>
    %467 = arith.addf %466, %465 : vector<2x32xf32>
    %468 = arith.divf %466, %467 : vector<2x32xf32>
    %c12_236 = arith.constant 12 : index
    %c0_237 = arith.constant 0 : index
    %469 = vector.load %arg16[%c12_236, %c0_237] : memref<16x32xf32, #tpu.memory_space<vmem>>, vector<2x32xf32>
    %470 = arith.mulf %461, %454 : vector<2x32xf32>
    %471 = arith.addf %469, %470 : vector<2x32xf32>
    %472 = math.tanh %471 : vector<2x32xf32>
    %cst_238 = arith.constant 1.000000e+00 : f32
    %473 = vector.broadcast %cst_238 : f32 to vector<2x32xf32>
    %474 = arith.subf %473, %468 : vector<2x32xf32>
    %475 = arith.mulf %474, %472 : vector<2x32xf32>
    %476 = arith.mulf %468, %448 : vector<2x32xf32>
    %477 = arith.addf %475, %476 : vector<2x32xf32>
    %c12_239 = arith.constant 12 : index
    %c0_240 = arith.constant 0 : index
    %478 = vector.load %arg13[%c12_239, %c0_240] : memref<16x32xf32, #tpu.memory_space<vmem>>, vector<2x32xf32>
    tpu.vector_store %arg13[%c12_239, %c0_240], %477 {strides = array<i32>} : memref<16x32xf32, #tpu.memory_space<vmem>>, vector<2x32xf32>,
    %cst_241 = arith.constant dense<0.000000e+00> : vector<2x32xf32>
    %479 = tpu.matmul %477, %271, %cst_241 {dimension_numbers = #tpu.dot_dimension_numbers<[1], [0], [0], [1], [0, 0, 1, 1], [], []>} : vector<2x32xf32>, vector<32x32xf32>, vector<2x32xf32> -> vector<2x32xf32>
    %cst_242 = arith.constant dense<0.000000e+00> : vector<2x32xf32>
    %480 = tpu.matmul %477, %272, %cst_242 {dimension_numbers = #tpu.dot_dimension_numbers<[1], [0], [0], [1], [0, 0, 1, 1], [], []>} : vector<2x32xf32>, vector<32x32xf32>, vector<2x32xf32> -> vector<2x32xf32>
    %cst_243 = arith.constant dense<0.000000e+00> : vector<2x32xf32>
    %481 = tpu.matmul %477, %273, %cst_243 {dimension_numbers = #tpu.dot_dimension_numbers<[1], [0], [0], [1], [0, 0, 1, 1], [], []>} : vector<2x32xf32>, vector<32x32xf32>, vector<2x32xf32> -> vector<2x32xf32>
    %482 = vector.broadcast %274 : vector<1x32xf32> to vector<2x32xf32>
    %483 = arith.addf %481, %482 : vector<2x32xf32>
    %c14_244 = arith.constant 14 : index
    %c0_245 = arith.constant 0 : index
    %484 = vector.load %arg14[%c14_244, %c0_245] : memref<16x32xf32, #tpu.memory_space<vmem>>, vector<2x32xf32>
    %485 = arith.addf %484, %479 : vector<2x32xf32>
    %486 = arith.negf %485 : vector<2x32xf32>
    %487 = math.exp %486 : vector<2x32xf32>
    %cst_246 = arith.constant 1.000000e+00 : f32
    %488 = vector.broadcast %cst_246 : f32 to vector<2x32xf32>
    %489 = arith.addf %488, %487 : vector<2x32xf32>
    %490 = arith.divf %488, %489 : vector<2x32xf32>
    %c14_247 = arith.constant 14 : index
    %c0_248 = arith.constant 0 : index
    %491 = vector.load %arg15[%c14_247, %c0_248] : memref<16x32xf32, #tpu.memory_space<vmem>>, vector<2x32xf32>
    %492 = arith.addf %491, %480 : vector<2x32xf32>
    %493 = arith.negf %492 : vector<2x32xf32>
    %494 = math.exp %493 : vector<2x32xf32>
    %cst_249 = arith.constant 1.000000e+00 : f32
    %495 = vector.broadcast %cst_249 : f32 to vector<2x32xf32>
    %496 = arith.addf %495, %494 : vector<2x32xf32>
    %497 = arith.divf %495, %496 : vector<2x32xf32>
    %c14_250 = arith.constant 14 : index
    %c0_251 = arith.constant 0 : index
    %498 = vector.load %arg16[%c14_250, %c0_251] : memref<16x32xf32, #tpu.memory_space<vmem>>, vector<2x32xf32>
    %499 = arith.mulf %490, %483 : vector<2x32xf32>
    %500 = arith.addf %498, %499 : vector<2x32xf32>
    %501 = math.tanh %500 : vector<2x32xf32>
    %cst_252 = arith.constant 1.000000e+00 : f32
    %502 = vector.broadcast %cst_252 : f32 to vector<2x32xf32>
    %503 = arith.subf %502, %497 : vector<2x32xf32>
    %504 = arith.mulf %503, %501 : vector<2x32xf32>
    %505 = arith.mulf %497, %477 : vector<2x32xf32>
    %506 = arith.addf %504, %505 : vector<2x32xf32>
    %c14_253 = arith.constant 14 : index
    %c0_254 = arith.constant 0 : index
    %507 = vector.load %arg13[%c14_253, %c0_254] : memref<16x32xf32, #tpu.memory_space<vmem>>, vector<2x32xf32>
    tpu.vector_store %arg13[%c14_253, %c0_254], %506 {strides = array<i32>} : memref<16x32xf32, #tpu.memory_space<vmem>>, vector<2x32xf32>,
    %c1 = arith.constant 1 : index
    %c0_255 = arith.constant 0 : index
    %c0_256 = arith.constant 0 : index
    %508 = vector.load %arg12[%c1, %c0_255, %c0_256] : memref<2x2x32xf32, #tpu.memory_space<vmem>>, vector<1x2x32xf32>
    %509 = vector.shape_cast %508 : vector<1x2x32xf32> to vector<2x32xf32>
    %510 = vector.shape_cast %506 : vector<2x32xf32> to vector<1x2x32xf32>
    tpu.vector_store %arg12[%c1, %c0_255, %c0_256], %510 {strides = array<i32>} : memref<2x2x32xf32, #tpu.memory_space<vmem>>, vector<1x2x32xf32>,
    %c0_257 = arith.constant 0 : index
    %c0_258 = arith.constant 0 : index
    %511 = vector.load %arg9[%c0_257, %c0_258] : memref<32x16xbf16, #tpu.memory_space<vmem>>, vector<32x16xbf16>
    %512 = arith.extf %511 : vector<32x16xbf16> to vector<32x16xf32>
    %c0_259 = arith.constant 0 : index
    %c0_260 = arith.constant 0 : index
    %513 = vector.load %arg13[%c0_259, %c0_260] : memref<16x32xf32, #tpu.memory_space<vmem>>, vector<16x32xf32>
    %cst_261 = arith.constant dense<0.000000e+00> : vector<16x16xf32>
    %514 = tpu.matmul %513, %512, %cst_261 {dimension_numbers = #tpu.dot_dimension_numbers<[1], [0], [0], [1], [0, 0, 1, 1], [], []>} : vector<16x32xf32>, vector<32x16xf32>, vector<16x16xf32> -> vector<16x16xf32>
    %c0_262 = arith.constant 0 : index
    %c0_263 = arith.constant 0 : index
    %515 = vector.load %arg10[%c0_262, %c0_263] : memref<1x16xf32, #tpu.memory_space<vmem>>, vector<1x16xf32>
    %516 = vector.broadcast %515 : vector<1x16xf32> to vector<16x16xf32>
    %517 = arith.addf %514, %516 : vector<16x16xf32>
    %cst_264 = arith.constant dense<0xFF800000> : vector<16xf32>
    %518 = vector.multi_reduction <maximumf>, %517, %cst_264 [1] : vector<16x16xf32> to vector<16xf32>
    %519 = vector.shape_cast %518 : vector<16xf32> to vector<16x1xf32>
    %520 = vector.broadcast %519 : vector<16x1xf32> to vector<16x16xf32>
    %521 = arith.subf %517, %520 : vector<16x16xf32>
    %522 = math.exp %521 : vector<16x16xf32>
    %cst_265 = arith.constant dense<0.000000e+00> : vector<16xf32>
    %523 = vector.multi_reduction <add>, %522, %cst_265 [1] : vector<16x16xf32> to vector<16xf32>
    %524 = vector.shape_cast %523 : vector<16xf32> to vector<16x1xf32>
    %525 = math.log %524 : vector<16x1xf32>
    %526 = arith.addf %519, %525 : vector<16x1xf32>
    %527 = vector.broadcast %526 : vector<16x1xf32> to vector<16x16xf32>
    %528 = arith.subf %517, %527 : vector<16x16xf32>
    %c0_266 = arith.constant 0 : index
    %c0_267 = arith.constant 0 : index
    %529 = vector.load %arg11[%c0_266, %c0_267] : memref<16x16xf32, #tpu.memory_space<vmem>>, vector<16x16xf32>
    tpu.vector_store %arg11[%c0_266, %c0_267], %528 {strides = array<i32>} : memref<16x16xf32, #tpu.memory_space<vmem>>, vector<16x16xf32>,
    return
  }
}

</mosaic_0001>

<bundles_post_ra>
// kernel: decoder_rnn_forward.1
= control target key start
LH: loop header
LB: loop body
LE: loop exit
PB: predicated region body
PF: predicated region fallthrough
CT: control target
= control target key end

     0   :  { %v5887_v1 = vmov 0   ;;  %v5888_v10 = vmov 0.0|0.0   ;;  %s5889_s29 = smov 96   ;;  %vm5891_vm0 = vmmov 0   ;;  %v5892_v13 = vmov 0.0   ;;  %s6529_s0 = inlined_call_operand.vmem [shape: bf16[16,196], index: 0, kind: input, shape index: {}]   ;;  %s6530_s1 = inlined_call_operand.vmem [shape: bf16[196,96], index: 1, kind: input, shape index: {}]   ;;  %s6531_s2 = inlined_call_operand.vmem [shape: bf16[32,96], index: 2, kind: input, shape index: {}]   ;;  %s6532_s3 = inlined_call_operand.vmem [shape: f32[1,96], index: 3, kind: input, shape index: {}]   ;;  %s6533_s4 = inlined_call_operand.vmem [shape: f32[1,32], index: 4, kind: input, shape index: {}]   ;;  %s6534_s5 = inlined_call_operand.vmem [shape: bf16[32,96], index: 5, kind: input, shape index: {}]   ;;  %s6535_s6 = inlined_call_operand.vmem [shape: bf16[32,96], index: 6, kind: input, shape index: {}]   ;;  %s6536_s7 = inlined_call_operand.vmem [shape: f32[1,96], index: 7, kind: input, shape index: {}]   ;;  %s6537_s8 = inlined_call_operand.vmem [shape: f32[1,32], index: 8, kind: input, shape index: {}]   ;;  %s6538_s9 = inlined_call_operand.vmem [shape: bf16[32,16], index: 9, kind: input, shape index: {}]   ;;  %s6539_s10 = inlined_call_operand.vmem [shape: f32[1,16], index: 10, kind: input, shape index: {}]   ;;  %s6540_s11 = inlined_call_operand.vmem [shape: f32[16,16], index: 11, kind: output, shape index: {0}]   ;;  %s6541_s12 = inlined_call_operand.hbm [shape: f32[2,2,32], index: 12, kind: output, shape index: {1}]  }
   0x1   :  { %v5682_v0 = vld [vmem:[%s6530_s1] sm:$0xff]   ;;  %170 = vmatprep.subr.bf16.mxu0 %v5887_v1  ;;  %v5683_v5 = vld [vmem:[%s6530_s1 + $0x8] sm:$0xff]   ;;  %5329 = vmatprep.subr.bf16.mxu1 %v5888_v10  ;;  %v5684_v12 = vld [vmem:[%s6530_s1 + $0x10] sm:$0xff]  }
   0x2   :  { %v5968_v2 = vld [vmem:[%s6531_s2] sm:$0xff]   ;;  %171 = vmatpush1.bf16.msra.mxu0 %v5682_v0  ;;  %v5978_v6 = vld [vmem:[%s6531_s2 + $0x8] sm:$0xff]   ;;  %s5890_s2 = smov 64   ;;  %4787 = vmatprep.mubr.msk.f32.mxu1 %vm5891_vm0, %v5892_v13  ;;  %v5685_v14 = vld [vmem:[%s6530_s1 + $0x18] sm:$0xff]  }
   0x3   :  { %v4493_v3 = vunpack.c.l.bf16 %v5968_v2  ;;  %v4494_v4 = vunpack.c.h.bf16 %v5968_v2  ;;  %172 = vmatprep.subr.bf16.mxu0 %v5887_v1  ;;  %v4497_v7 = vunpack.c.l.bf16 %v5978_v6  ;;  %v4498_v8 = vunpack.c.h.bf16 %v5978_v6  ;;  %5331 = vmatpush3.bf16.msra.mxu1 %v5968_v2  ;;  %v42_v15 = vld [vmem:[%s6529_s0] sm:$0xff]  ;;  %v43_v16 = vld [vmem:[%s6529_s0 + $0x8] sm:$0xff] }
   0x4   :  { %5332 = vmatprep.subr.bf16.mxu1 %v5888_v10  ;;  %v5686_v17 = vld [vmem:[%s6530_s1 + $0x20] sm:$0xff]   ;;  %v44_v18 = vmax.bf16 %v5887_v1, %v42_v15  ;;  %v45_v19 = vmax.bf16 %v5887_v1, %v43_v16 }
   0x5   :  { %v5642_v9 = vpack.i.bf16 %v4494_v4, %v4493_v3  ;;  %v5647_v11 = vpack.i.bf16 %v4498_v8, %v4497_v7 }
   0x6   :  { %173 = vmatpush1.bf16.msra.mxu0 %v5683_v5 }
   0x7   :  { %5643 = vrot.lane.b32.xlu0 %v5642_v9, %s5889_s29  ;;  %174 = vmatprep.subr.bf16.mxu0 %v5887_v1 }
   0x8   :  { %5653 = vrot.lane.b32.xlu1 %v5642_v9, %s5890_s2  ;;  %5334 = vmatpush3.bf16.msra.mxu1 %v5978_v6 }
   0x9   :  { %5335 = vmatprep.subr.bf16.mxu1 %v5888_v10 }
   0xa   :  { %175 = vmatpush1.bf16.msra.mxu0 %v5684_v12 }
   0xb   :  { %5648 = vrot.lane.b32.xlu0 %v5647_v11, %s5889_s29  ;;  %176 = vmatprep.subr.bf16.mxu0 %v5887_v1 }
   0xc   :  { %5658 = vrot.lane.b32.xlu1 %v5647_v11, %s5890_s2 }
   0xe   :  { %177 = vmatpush1.bf16.msra.mxu0 %v5685_v14 }
   0xf   :  { %18 = vsyncpa [#allocation7], 0  ;;  %178 = vmatprep.subr.bf16.mxu0 %v5887_v1  ;;  %vm162_vm1 = vcmask 556032   ;;  %4788 = vmatmul.mubr.f32.vlgmr.msra.gmra.mrb[0].mxu1 %v5892_v13  ;;  %v4394_v20 = vcombine.high %v44_v18, %v45_v19  ;;  %v5687_v21 = vld [vmem:[%s6530_s1 + $0x28] sm:$0xff]   ;;  %v5688_v22 = vld [vmem:[%s6530_s1 + $0x30] sm:$0xff]   ;;  %vm166_vm2 = vcmask 1041408   ;;  %v4393_v30 = vcombine.low %v44_v18, %v45_v19 }
  0x10   :  { %4798 = vmatprep.mubr.msk.f32.mxu1 %vm5891_vm0, %v5892_v13  ;;  %v5689_v23 = vld [vmem:[%s6530_s1 + $0x38] sm:$0xff]   ;;  %v5690_v24 = vld [vmem:[%s6530_s1 + $0x40] sm:$0xff]   ;;  %v5691_v25 = vld [vmem:[%s6530_s1 + $0x48] sm:$0xff]   ;;  %vm211_vm3 = vcmask 261120   ;;  %vm512_vm4 = vcmask 254976   ;;  %vm4343_vm5 = vcmask 130048  }
  0x11   :  { %4408 = vmatprep.mubr.msk.bf16.mxu0 %vm162_vm1, %v4394_v20  ;;  %v5692_v26 = vld [vmem:[%s6530_s1 + $0x50] sm:$0xff]   ;;  %v5693_v27 = vld [vmem:[%s6530_s1 + $0x58] sm:$0xff]   ;;  %v5694_v28 = vld [vmem:[%s6530_s1 + $0x60] ss:$0 sps:$4 sm:$0x33]  }
  0x12   :  { %179 = vmatpush1.bf16.msra.mxu0 %v5686_v17  ;;  %v168_v29 = vsel %vm166_vm2, %v5694_v28, 0  ;;  %v4392_v49 = vld [vmem:[%s6532_s3] ss:$0 sm:$0xff] }
  0x13   :  { %180 = vmatprep.subr.bf16.mxu0 %v5887_v1  ;;  %v6094_v63 = vld [vmem:[%s6533_s4] ss:$0 sm:$0xff] }
  0x16   :  { %181 = vmatpush1.bf16.msra.mxu0 %v5687_v21 }
  0x17   :  { %182 = vmatprep.subr.bf16.mxu0 %v5887_v1 }
  0x1a   :  { %183 = vmatpush1.bf16.msra.mxu0 %v5688_v22 }
  0x1b   :  { %184 = vmatprep.subr.bf16.mxu0 %v5887_v1 }
  0x1e   :  { %185 = vmatpush1.bf16.msra.mxu0 %v5689_v23 }
  0x1f   :  { %186 = vmatprep.subr.bf16.mxu0 %v5887_v1 }
  0x22   :  { %187 = vmatpush1.bf16.msra.mxu0 %v5690_v24 }
  0x23   :  { %188 = vmatprep.subr.bf16.mxu0 %v5887_v1 }
  0x26   :  { %189 = vmatpush1.bf16.msra.mxu0 %v5691_v25 }
  0x27   :  { %190 = vmatprep.subr.bf16.mxu0 %v5887_v1 }
  0x2a   :  { %191 = vmatpush1.bf16.msra.mxu0 %v5692_v26 }
  0x2b   :  { %192 = vmatprep.subr.bf16.mxu0 %v5887_v1 }
  0x2e   :  { %193 = vmatpush1.bf16.msra.mxu0 %v5693_v27 }
  0x2f   :  { %194 = vmatprep.subr.bf16.mxu0 %v5887_v1 }
  0x32   :  { %195 = vmatpush1.bf16.msra.mxu0 %v168_v29 }
  0x33   :  { %5371 = vmatprep.subr.bf16.mxu0 %v5888_v10 }
  0x35   :  { %203 = vmatmul.mubr.bf16.vlgmr.msra.gmra.mrb[0].mxu0 %v4393_v30 }
  0x36   :  { %4864 = vmatprep.mubr.msk.f32.mxu0 %vm5891_vm0, %v5892_v13 }
  0x79   :  { %v5644_v31 = vpop.permute.xlu0 %5643 }
  0x7a   :  { %v5646_v32 = vunpack.i.h.bf16 %v5644_v31  ;;  %v5645_v33 = vunpack.i.l.bf16 %v5644_v31  ;;  %v5654_v34 = vpop.permute.xlu1 %5653 }
  0x7b   :  { %v5656_v39 = vunpack.i.h.bf16 %v5654_v34  ;;  %v5655_v40 = vunpack.i.l.bf16 %v5654_v34 }
  0x7c   :  { %v6052_v35 = vpack.c.bf16 %v5646_v32, %v5645_v33 }
  0x7d   :  { %v5649_v36 = vpop.permute.xlu0 %5648  ;;  %v6060_v43 = vpack.c.bf16 %v5656_v39, %v5655_v40 }
  0x7e   :  { %v5651_v37 = vunpack.i.h.bf16 %v5649_v36  ;;  %v5650_v38 = vunpack.i.l.bf16 %v5649_v36  ;;  %5337 = vmatpush3.bf16.msra.mxu1 %v6052_v35  ;;  %5373 = vmatpush3.bf16.msra.mxu0 %v6052_v35  ;;  %v5659_v41 = vpop.permute.xlu1 %5658 }
  0x7f   :  { %5338 = vmatprep.subr.bf16.mxu1 %v5888_v10  ;;  %5374 = vmatprep.subr.bf16.mxu0 %v5888_v10  ;;  %v5661_v44 = vunpack.i.h.bf16 %v5659_v41  ;;  %v5660_v45 = vunpack.i.l.bf16 %v5659_v41 }
  0x80   :  { %v6058_v42 = vpack.c.bf16 %v5651_v37, %v5650_v38 }
  0x81   :  { %v6067_v46 = vpack.c.bf16 %v5661_v44, %v5660_v45 }
  0x82   :  { %5340 = vmatpush3.bf16.msra.mxu1 %v6058_v42  ;;  %5376 = vmatpush3.bf16.msra.mxu0 %v6058_v42 }
  0x83   :  { %5341 = vmatprep.subr.bf16.mxu1 %v5888_v10  ;;  %5383 = vmatprep.subr.bf16.mxu0 %v5888_v10 }
  0x85   :  { %4799 = vmatmul.mubr.f32.vlgmr.msra.gmra.mrb[2].mxu1 %v5892_v13 }
  0x86   :  { %5343 = vmatpush3.bf16.msra.mxu1 %v6060_v43  ;;  %4809 = vmatprep.mubr.msk.f32.mxu1 %vm5891_vm0, %v5892_v13 }
  0x87   :  { %5344 = vmatprep.subr.bf16.mxu1 %v5888_v10 }
  0x8a   :  { %5346 = vmatpush3.bf16.msra.mxu1 %v6067_v46 }
  0x8b   :  { %5347 = vmatprep.subr.bf16.mxu1 %v5888_v10 }
  0x8d   :  { %4810 = vmatmul.mubr.f32.vlgmr.msra.gmra.mrb[4].mxu1 %v5892_v13 }
  0x8e   :  { %5349 = vmatpush3.bf16.msra.mxu1 %v5968_v2  ;;  %4820 = vmatprep.mubr.msk.f32.mxu1 %vm5891_vm0, %v5892_v13 }
  0x8f   :  { %5350 = vmatprep.subr.bf16.mxu1 %v5888_v10 }
  0x92   :  { %5352 = vmatpush3.bf16.msra.mxu1 %v5978_v6 }
  0x93   :  { %5353 = vmatprep.subr.bf16.mxu1 %v5888_v10 }
  0xe2   :  { %v310_v47 = vpop.f32.mrb[0].mxu1 }
  0xe3   :  { %v4789_v48 = vpop.f32.mrb[1].mxu1 }
 0x108   :  { %v204_v50 = vpop.f32.mrb[0].mxu0 }
 0x109   :  { %v205_v51 = vadd.f32 %v4392_v49, %v204_v50  ;;  %v206_v52 = vpop.f32.mrb[1].mxu0 }
 0x10a   :  { %v207_v53 = vpop.f32.mrb[2].mxu0 }
 0x10b   :  { %212 = vst.msk [vmem:[#allocation3] sm:$0xff] %vm211_vm3, %v205_v51  ;;  %v208_v54 = vadd.f32 %v4392_v49, %v207_v53  ;;  %v209_v55 = vpop.f32.mrb[3].mxu0  ;;  %224 = vrot.lane.b32.xlu1 %v205_v51, %s5890_s2  ;;  %216 = vrot.lane.b32.xlu0 %v205_v51, %s5889_s29 }
 0x10d   :  { %213 = vst.msk [vmem:[#allocation3 + $0x8] sm:$0xff] %vm211_vm3, %v208_v54 }
 0x10f   :  { %226 = vrot.lane.b32.xlu1 %v208_v54, %s5890_s2  ;;  %218 = vrot.lane.b32.xlu0 %v208_v54, %s5889_s29 }
 0x112   :  { %v488_v56 = vld [vmem:[#allocation3] sm:$0x3]  ;;  %v727_v27 = vld [vmem:[#allocation3 + $0x2] sm:$0x3] }
 0x113   :  { %v489_v57 = vadd.f32 %v488_v56, %v310_v47 }
 0x115   :  { %v4410_v58 = vmul.f32 -1.442695, %v489_v57 }
 0x117   :  { %5695 = vpow2.f32 %v4410_v58  ;;  %v965_v58 = vld [vmem:[#allocation3 + $0x4] sm:$0x3] }
 0x121   :  { %v5696_v59 = vpop.eup %5695 }
 0x122   :  { %v493_v60 = vadd.f32 1.0, %v5696_v59 }
 0x124   :  { %5697 = vrcp.f32 %v493_v60 }
 0x12e   :  { %v5698_v4 = vpop.eup %5697 }
 0x158   :  { %v396_v61 = vpop.f32.mrb[2].mxu1 }
 0x159   :  { %v4800_v62 = vpop.f32.mrb[3].mxu1 }
 0x160   :  { %v484_v0 = vpop.f32.mrb[4].mxu1 }
 0x161   :  { %v485_v1 = vadd.f32 %v6094_v63, %v484_v0  ;;  %v4811_v3 = vpop.f32.mrb[5].mxu1 }
 0x163   :  { %v505_v5 = vmul.f32 %v5698_v4, %v485_v1 }
 0x17d   :  { %v225_v7 = vpop.permute.xlu1 %224  ;;  %v217_v8 = vpop.permute.xlu0 %216 }
 0x17e   :  { %230 = vst.msk [vmem:[#allocation5] sm:$0xff] %vm211_vm3, %v225_v7  ;;  %222 = vst.msk [vmem:[#allocation4] sm:$0xff] %vm211_vm3, %v217_v8 }
 0x181   :  { %v227_v9 = vpop.permute.xlu1 %226  ;;  %v219_v11 = vpop.permute.xlu0 %218 }
 0x182   :  { %231 = vst.msk [vmem:[#allocation5 + $0x8] sm:$0xff] %vm211_vm3, %v227_v9  ;;  %223 = vst.msk [vmem:[#allocation4 + $0x8] sm:$0xff] %vm211_vm3, %v219_v11 }
 0x185   :  { %v496_v12 = vld [vmem:[#allocation4] sm:$0x3]  ;;  %v504_v16 = vld [vmem:[#allocation5] sm:$0x3]  ;;  %v735_v32 = vld [vmem:[#allocation4 + $0x2] sm:$0x3] }
 0x186   :  { %v497_v14 = vadd.f32 %v496_v12, %v396_v61  ;;  %v506_v19 = vadd.f32 %v505_v5, %v504_v16  ;;  %v743_v49 = vld [vmem:[#allocation5 + $0x2] sm:$0x3]  ;;  %v973_v1 = vld [vmem:[#allocation4 + $0x4] sm:$0x3] }
 0x188   :  { %v4411_v15 = vmul.f32 -1.442695, %v497_v14 }
 0x18a   :  { %5699 = vpow2.f32 %v4411_v15 }
 0x194   :  { %v5700_v17 = vpop.eup %5699 }
 0x195   :  { %v501_v18 = vadd.f32 1.0, %v5700_v17  ;;  %v981_v17 = vld [vmem:[#allocation5 + $0x4] sm:$0x3] }
 0x197   :  { %5701 = vrcp.f32 %v501_v18 }
 0x198   :  { %5703 = vtanh.f32 %v506_v19 }
 0x1a1   :  { %v5702_v20 = vpop.eup %5701 }
 0x1a2   :  { %v508_v21 = vsub.f32 1.0, %v5702_v20  ;;  %v5704_v22 = vpop.eup %5703  ;;  %v510_v24 = vmul.f32 0.0, %v5702_v20 }
 0x1a4   :  { %v509_v23 = vmul.f32 %v5704_v22, %v508_v21 }
 0x1a6   :  { %v511_v25 = vadd.f32 %v510_v24, %v509_v23 }
 0x1a8   :  { %513 = vst.msk [vmem:[#allocation2] sm:$0x3] %vm512_vm4, %v511_v25  ;;  %4821 = vmatmul.mubr.msk.f32.vlgmr.msra.gmra.mrb[6].mxu1 %vm211_vm3, %v511_v25 }
 0x1a9   :  { %5355 = vmatpush3.bf16.msra.mxu1 %v6052_v35  ;;  %4831 = vmatprep.mubr.msk.f32.mxu1 %vm5891_vm0, %v5892_v13 }
 0x1aa   :  { %5356 = vmatprep.subr.bf16.mxu1 %v5888_v10 }
 0x1ad   :  { %5358 = vmatpush3.bf16.msra.mxu1 %v6058_v42 }
 0x1ae   :  { %5359 = vmatprep.subr.bf16.mxu1 %v5888_v10 }
 0x1b0   :  { %4832 = vmatmul.mubr.msk.f32.vlgmr.msra.gmra.mrb[8].mxu1 %vm211_vm3, %v511_v25 }
 0x1b1   :  { %5361 = vmatpush3.bf16.msra.mxu1 %v6060_v43  ;;  %4842 = vmatprep.mubr.msk.f32.mxu1 %vm5891_vm0, %v5892_v13 }
 0x1b2   :  { %5362 = vmatprep.subr.bf16.mxu1 %v5888_v10 }
 0x1b5   :  { %5364 = vmatpush3.bf16.msra.mxu1 %v6067_v46 }
 0x1b6   :  { %5365 = vmatprep.subr.bf16.mxu1 %v5888_v10 }
 0x1b8   :  { %4843 = vmatmul.mubr.msk.f32.vlgmr.msra.gmra.mrb[10].mxu1 %vm211_vm3, %v511_v25 }
 0x1b9   :  { %5367 = vmatpush3.bf16.msra.mxu1 %v5968_v2  ;;  %4853 = vmatprep.mubr.msk.f32.mxu1 %vm5891_vm0, %v5892_v13 }
 0x1ba   :  { %5368 = vmatprep.subr.bf16.mxu1 %v5888_v10 }
 0x1bd   :  { %5370 = vmatpush3.bf16.msra.mxu1 %v5978_v6 }
 0x1be   :  { %5377 = vmatprep.subr.bf16.mxu1 %v5888_v10 }
 0x27b   :  { %v583_v26 = vpop.f32.mrb[6].mxu1 }
 0x27c   :  { %v728_v28 = vadd.f32 %v727_v27, %v583_v26  ;;  %v4822_v29 = vpop.f32.mrb[7].mxu1  ;;  %v1203_v26 = vld [vmem:[#allocation3 + $0x6] sm:$0x3] }
 0x27e   :  { %v4415_v30 = vmul.f32 -1.442695, %v728_v28 }
 0x280   :  { %5705 = vpow2.f32 %v4415_v30 }
 0x283   :  { %v653_v31 = vpop.f32.mrb[8].mxu1 }
 0x284   :  { %v736_v33 = vadd.f32 %v735_v32, %v653_v31  ;;  %v4833_v34 = vpop.f32.mrb[9].mxu1  ;;  %v1211_v32 = vld [vmem:[#allocation4 + $0x6] sm:$0x3] }
 0x286   :  { %v4416_v36 = vmul.f32 -1.442695, %v736_v33 }
 0x288   :  { %5707 = vpow2.f32 %v4416_v36 }
 0x28a   :  { %v5706_v37 = vpop.eup %5705 }
 0x28b   :  { %v732_v38 = vadd.f32 1.0, %v5706_v37  ;;  %v723_v39 = vpop.f32.mrb[10].mxu1 }
 0x28c   :  { %v4844_v40 = vpop.f32.mrb[11].mxu1  ;;  %v724_v45 = vadd.f32 %v6094_v63, %v723_v39 }
 0x28d   :  { %5709 = vrcp.f32 %v732_v38 }
 0x292   :  { %v5708_v41 = vpop.eup %5707 }
 0x293   :  { %v740_v44 = vadd.f32 1.0, %v5708_v41 }
 0x295   :  { %5711 = vrcp.f32 %v740_v44 }
 0x297   :  { %v5710_v47 = vpop.eup %5709 }
 0x298   :  { %v744_v48 = vmul.f32 %v5710_v47, %v724_v45 }
 0x29a   :  { %v745_v50 = vadd.f32 %v744_v48, %v743_v49  ;;  %v1219_v48 = vld [vmem:[#allocation5 + $0x6] sm:$0x3] }
 0x29c   :  { %5713 = vtanh.f32 %v745_v50 }
 0x29f   :  { %v5712_v51 = vpop.eup %5711 }
 0x2a0   :  { %v747_v52 = vsub.f32 1.0, %v5712_v51  ;;  %v749_v55 = vmul.f32 %v5712_v51, %v511_v25 }
 0x2a6   :  { %v5714_v53 = vpop.eup %5713 }
 0x2a7   :  { %v748_v54 = vmul.f32 %v5714_v53, %v747_v52 }
 0x2a9   :  { %v750_v56 = vadd.f32 %v749_v55, %v748_v54 }
 0x2ab   :  { %751 = vst.msk [vmem:[#allocation2 + $0x2] sm:$0x3] %vm512_vm4, %v750_v56  ;;  %4854 = vmatmul.mubr.msk.f32.vlgmr.msra.gmra.mrb[12].mxu1 %vm211_vm3, %v750_v56  ;;  %4865 = vmatmul.mubr.msk.f32.vlgmr.msra.gmra.mrb[4].mxu0 %vm211_vm3, %v750_v56 }
 0x2ac   :  { %5379 = vmatpush3.bf16.msra.mxu1 %v6060_v43  ;;  %4875 = vmatprep.mubr.msk.f32.mxu1 %vm5891_vm0, %v5892_v13 }
 0x2ad   :  { %5380 = vmatprep.subr.bf16.mxu1 %v5888_v10  ;;  %5385 = vmatpush3.bf16.msra.mxu0 %v5968_v2 }
 0x2ae   :  { %5386 = vmatprep.subr.bf16.mxu0 %v5888_v10  ;;  %4886 = vmatprep.mubr.msk.f32.mxu0 %vm5891_vm0, %v5892_v13 }
 0x2b0   :  { %5382 = vmatpush3.bf16.msra.mxu1 %v6067_v46 }
 0x2b1   :  { %5389 = vmatprep.subr.bf16.mxu1 %v5888_v10  ;;  %5388 = vmatpush3.bf16.msra.mxu0 %v5978_v6 }
 0x2b2   :  { %5395 = vmatprep.subr.bf16.mxu0 %v5888_v10 }
 0x2b3   :  { %4876 = vmatmul.mubr.msk.f32.vlgmr.msra.gmra.mrb[14].mxu1 %vm211_vm3, %v750_v56 }
 0x2b4   :  { %5391 = vmatpush3.bf16.msra.mxu1 %v6052_v35  ;;  %4897 = vmatprep.mubr.msk.f32.mxu1 %vm5891_vm0, %v5892_v13 }
 0x2b5   :  { %5392 = vmatprep.subr.bf16.mxu1 %v5888_v10 }
 0x2b8   :  { %5394 = vmatpush3.bf16.msra.mxu1 %v6058_v42 }
 0x2b9   :  { %5401 = vmatprep.subr.bf16.mxu1 %v5888_v10 }
 0x37e   :  { %v821_v57 = vpop.f32.mrb[12].mxu1  ;;  %v891_v59 = vpop.f32.mrb[4].mxu0 }
 0x37f   :  { %v966_v60 = vadd.f32 %v965_v58, %v821_v57  ;;  %v4855_v61 = vpop.f32.mrb[13].mxu1  ;;  %v4866_v62 = vpop.f32.mrb[5].mxu0  ;;  %v974_v3 = vadd.f32 %v973_v1, %v891_v59  ;;  %v1441_v57 = vld [vmem:[#allocation3 + $0x8] sm:$0x3] }
 0x381   :  { %v4420_v0 = vmul.f32 -1.442695, %v966_v60  ;;  %v4421_v4 = vmul.f32 -1.442695, %v974_v3 }
 0x383   :  { %5715 = vpow2.f32 %v4420_v0  ;;  %v1449_v0 = vld [vmem:[#allocation4 + $0x8] sm:$0x3] }
 0x384   :  { %5717 = vpow2.f32 %v4421_v4 }
 0x386   :  { %v961_v5 = vpop.f32.mrb[14].mxu1 }
 0x387   :  { %v4877_v7 = vpop.f32.mrb[15].mxu1  ;;  %v962_v14 = vadd.f32 %v6094_v63, %v961_v5 }
 0x38d   :  { %v5716_v8 = vpop.eup %5715 }
 0x38e   :  { %v970_v9 = vadd.f32 1.0, %v5716_v8  ;;  %v5718_v11 = vpop.eup %5717 }
 0x38f   :  { %v978_v12 = vadd.f32 1.0, %v5718_v11 }
 0x390   :  { %5719 = vrcp.f32 %v970_v9 }
 0x391   :  { %5721 = vrcp.f32 %v978_v12 }
 0x39a   :  { %v5720_v15 = vpop.eup %5719 }
 0x39b   :  { %v982_v16 = vmul.f32 %v5720_v15, %v962_v14  ;;  %v5722_v19 = vpop.eup %5721 }
 0x39c   :  { %v985_v20 = vsub.f32 1.0, %v5722_v19  ;;  %v987_v23 = vmul.f32 %v5722_v19, %v750_v56 }
 0x39d   :  { %v983_v18 = vadd.f32 %v982_v16, %v981_v17  ;;  %v1457_v16 = vld [vmem:[#allocation5 + $0x8] sm:$0x3] }
 0x39f   :  { %5723 = vtanh.f32 %v983_v18 }
 0x3a9   :  { %v5724_v21 = vpop.eup %5723 }
 0x3aa   :  { %v986_v22 = vmul.f32 %v5724_v21, %v985_v20 }
 0x3ac   :  { %v988_v24 = vadd.f32 %v987_v23, %v986_v22 }
 0x3ae   :  { %989 = vst.msk [vmem:[#allocation2 + $0x4] sm:$0x3] %vm512_vm4, %v988_v24  ;;  %4887 = vmatmul.mubr.msk.f32.vlgmr.msra.gmra.mrb[6].mxu0 %vm211_vm3, %v988_v24  ;;  %4898 = vmatmul.mubr.msk.f32.vlgmr.msra.gmra.mrb[16].mxu1 %vm211_vm3, %v988_v24 }
 0x3af   :  { %5397 = vmatpush3.bf16.msra.mxu0 %v6060_v43  ;;  %4908 = vmatprep.mubr.msk.f32.mxu0 %vm5891_vm0, %v5892_v13 }
 0x3b0   :  { %5398 = vmatprep.subr.bf16.mxu0 %v5888_v10  ;;  %5403 = vmatpush3.bf16.msra.mxu1 %v5968_v2 }
 0x3b1   :  { %5404 = vmatprep.subr.bf16.mxu1 %v5888_v10  ;;  %4919 = vmatprep.mubr.msk.f32.mxu1 %vm5891_vm0, %v5892_v13 }
 0x3b3   :  { %5400 = vmatpush3.bf16.msra.mxu0 %v6067_v46 }
 0x3b4   :  { %5407 = vmatprep.subr.bf16.mxu0 %v5888_v10  ;;  %5406 = vmatpush3.bf16.msra.mxu1 %v5978_v6 }
 0x3b5   :  { %5413 = vmatprep.subr.bf16.mxu1 %v5888_v10 }
 0x3b6   :  { %4909 = vmatmul.mubr.msk.f32.vlgmr.msra.gmra.mrb[8].mxu0 %vm211_vm3, %v988_v24 }
 0x3b7   :  { %5409 = vmatpush3.bf16.msra.mxu0 %v6052_v35  ;;  %4930 = vmatprep.mubr.msk.f32.mxu0 %vm5891_vm0, %v5892_v13 }
 0x3b8   :  { %5410 = vmatprep.subr.bf16.mxu0 %v5888_v10 }
 0x3bb   :  { %5412 = vmatpush3.bf16.msra.mxu0 %v6058_v42 }
 0x3bc   :  { %5419 = vmatprep.subr.bf16.mxu0 %v5888_v10 }
 0x481   :  { %v1059_v25 = vpop.f32.mrb[6].mxu0  ;;  %v1129_v27 = vpop.f32.mrb[16].mxu1 }
 0x482   :  { %v1204_v28 = vadd.f32 %v1203_v26, %v1059_v25  ;;  %v4888_v29 = vpop.f32.mrb[7].mxu0  ;;  %v4899_v30 = vpop.f32.mrb[17].mxu1  ;;  %v1212_v33 = vadd.f32 %v1211_v32, %v1129_v27  ;;  %v1679_v25 = vld [vmem:[#allocation3 + $0xa] sm:$0x3] }
 0x484   :  { %v4425_v31 = vmul.f32 -1.442695, %v1204_v28  ;;  %v4426_v34 = vmul.f32 -1.442695, %v1212_v33 }
 0x486   :  { %5725 = vpow2.f32 %v4425_v31  ;;  %v1687_v31 = vld [vmem:[#allocation4 + $0xa] sm:$0x3] }
 0x487   :  { %5727 = vpow2.f32 %v4426_v34 }
 0x489   :  { %v1199_v36 = vpop.f32.mrb[8].mxu0 }
 0x48a   :  { %v4910_v37 = vpop.f32.mrb[9].mxu0  ;;  %v1200_v44 = vadd.f32 %v6094_v63, %v1199_v36 }
 0x490   :  { %v5726_v38 = vpop.eup %5725 }
 0x491   :  { %v1208_v39 = vadd.f32 1.0, %v5726_v38  ;;  %v5728_v40 = vpop.eup %5727 }
 0x492   :  { %v1216_v41 = vadd.f32 1.0, %v5728_v40 }
 0x493   :  { %5729 = vrcp.f32 %v1208_v39 }
 0x494   :  { %5731 = vrcp.f32 %v1216_v41 }
 0x49d   :  { %v5730_v45 = vpop.eup %5729 }
 0x49e   :  { %v1220_v47 = vmul.f32 %v5730_v45, %v1200_v44  ;;  %v5732_v50 = vpop.eup %5731 }
 0x49f   :  { %v1223_v51 = vsub.f32 1.0, %v5732_v50  ;;  %v1225_v54 = vmul.f32 %v5732_v50, %v988_v24 }
 0x4a0   :  { %v1221_v49 = vadd.f32 %v1220_v47, %v1219_v48  ;;  %v1695_v47 = vld [vmem:[#allocation5 + $0xa] sm:$0x3] }
 0x4a2   :  { %5733 = vtanh.f32 %v1221_v49 }
 0x4ac   :  { %v5734_v52 = vpop.eup %5733 }
 0x4ad   :  { %v1224_v53 = vmul.f32 %v5734_v52, %v1223_v51 }
 0x4af   :  { %v1226_v55 = vadd.f32 %v1225_v54, %v1224_v53 }
 0x4b1   :  { %1227 = vst.msk [vmem:[#allocation2 + $0x6] sm:$0x3] %vm512_vm4, %v1226_v55  ;;  %4920 = vmatmul.mubr.msk.f32.vlgmr.msra.gmra.mrb[18].mxu1 %vm211_vm3, %v1226_v55  ;;  %4931 = vmatmul.mubr.msk.f32.vlgmr.msra.gmra.mrb[10].mxu0 %vm211_vm3, %v1226_v55 }
 0x4b2   :  { %5415 = vmatpush3.bf16.msra.mxu1 %v6060_v43  ;;  %4941 = vmatprep.mubr.msk.f32.mxu1 %vm5891_vm0, %v5892_v13 }
 0x4b3   :  { %5416 = vmatprep.subr.bf16.mxu1 %v5888_v10  ;;  %5421 = vmatpush3.bf16.msra.mxu0 %v5968_v2 }
 0x4b4   :  { %5422 = vmatprep.subr.bf16.mxu0 %v5888_v10  ;;  %4952 = vmatprep.mubr.msk.f32.mxu0 %vm5891_vm0, %v5892_v13 }
 0x4b6   :  { %5418 = vmatpush3.bf16.msra.mxu1 %v6067_v46 }
 0x4b7   :  { %5425 = vmatprep.subr.bf16.mxu1 %v5888_v10  ;;  %5424 = vmatpush3.bf16.msra.mxu0 %v5978_v6 }
 0x4b8   :  { %5431 = vmatprep.subr.bf16.mxu0 %v5888_v10 }
 0x4b9   :  { %4942 = vmatmul.mubr.msk.f32.vlgmr.msra.gmra.mrb[20].mxu1 %vm211_vm3, %v1226_v55 }
 0x4ba   :  { %5427 = vmatpush3.bf16.msra.mxu1 %v6052_v35  ;;  %4963 = vmatprep.mubr.msk.f32.mxu1 %vm5891_vm0, %v5892_v13 }
 0x4bb   :  { %5428 = vmatprep.subr.bf16.mxu1 %v5888_v10 }
 0x4be   :  { %5430 = vmatpush3.bf16.msra.mxu1 %v6058_v42 }
 0x4bf   :  { %5437 = vmatprep.subr.bf16.mxu1 %v5888_v10 }
 0x584   :  { %v1297_v56 = vpop.f32.mrb[18].mxu1  ;;  %v1367_v58 = vpop.f32.mrb[10].mxu0 }
 0x585   :  { %v1442_v59 = vadd.f32 %v1441_v57, %v1297_v56  ;;  %v4921_v60 = vpop.f32.mrb[19].mxu1  ;;  %v4932_v61 = vpop.f32.mrb[11].mxu0  ;;  %v1450_v1 = vadd.f32 %v1449_v0, %v1367_v58 }
 0x586   :  { %v1917_v60 = vld [vmem:[#allocation3 + $0xc] sm:$0x3] }
 0x587   :  { %v4430_v62 = vmul.f32 -1.442695, %v1442_v59  ;;  %v4431_v3 = vmul.f32 -1.442695, %v1450_v1 }
 0x589   :  { %5735 = vpow2.f32 %v4430_v62 }
 0x58a   :  { %5737 = vpow2.f32 %v4431_v3 }
 0x58c   :  { %v1437_v4 = vpop.f32.mrb[20].mxu1 }
 0x58d   :  { %v4943_v5 = vpop.f32.mrb[21].mxu1  ;;  %v1438_v12 = vadd.f32 %v6094_v63, %v1437_v4  ;;  %v1925_v4 = vld [vmem:[#allocation4 + $0xc] sm:$0x3] }
 0x593   :  { %v5736_v7 = vpop.eup %5735 }
 0x594   :  { %v1446_v8 = vadd.f32 1.0, %v5736_v7  ;;  %v5738_v9 = vpop.eup %5737 }
 0x595   :  { %v1454_v11 = vadd.f32 1.0, %v5738_v9 }
 0x596   :  { %5739 = vrcp.f32 %v1446_v8 }
 0x597   :  { %5741 = vrcp.f32 %v1454_v11 }
 0x5a0   :  { %v5740_v14 = vpop.eup %5739 }
 0x5a1   :  { %v1458_v15 = vmul.f32 %v5740_v14, %v1438_v12  ;;  %v5742_v18 = vpop.eup %5741 }
 0x5a2   :  { %v1461_v19 = vsub.f32 1.0, %v5742_v18  ;;  %v1463_v22 = vmul.f32 %v5742_v18, %v1226_v55 }
 0x5a3   :  { %v1459_v17 = vadd.f32 %v1458_v15, %v1457_v16 }
 0x5a5   :  { %5743 = vtanh.f32 %v1459_v17 }
 0x5af   :  { %v5744_v20 = vpop.eup %5743 }
 0x5b0   :  { %v1462_v21 = vmul.f32 %v5744_v20, %v1461_v19  ;;  %v1933_v19 = vld [vmem:[#allocation5 + $0xc] sm:$0x3] }
 0x5b2   :  { %v1464_v23 = vadd.f32 %v1463_v22, %v1462_v21 }
 0x5b4   :  { %1465 = vst.msk [vmem:[#allocation2 + $0x8] sm:$0x3] %vm512_vm4, %v1464_v23  ;;  %4953 = vmatmul.mubr.msk.f32.vlgmr.msra.gmra.mrb[12].mxu0 %vm211_vm3, %v1464_v23  ;;  %4964 = vmatmul.mubr.msk.f32.vlgmr.msra.gmra.mrb[22].mxu1 %vm211_vm3, %v1464_v23 }
 0x5b5   :  { %5433 = vmatpush3.bf16.msra.mxu0 %v6060_v43  ;;  %4974 = vmatprep.mubr.msk.f32.mxu0 %vm5891_vm0, %v5892_v13 }
 0x5b6   :  { %5434 = vmatprep.subr.bf16.mxu0 %v5888_v10  ;;  %5439 = vmatpush3.bf16.msra.mxu1 %v5968_v2 }
 0x5b7   :  { %5440 = vmatprep.subr.bf16.mxu1 %v5888_v10  ;;  %4985 = vmatprep.mubr.msk.f32.mxu1 %vm5891_vm0, %v5892_v13 }
 0x5b9   :  { %5436 = vmatpush3.bf16.msra.mxu0 %v6067_v46 }
 0x5ba   :  { %5443 = vmatprep.subr.bf16.mxu0 %v5888_v10  ;;  %5442 = vmatpush3.bf16.msra.mxu1 %v5978_v6 }
 0x5bb   :  { %5449 = vmatprep.subr.bf16.mxu1 %v5888_v10 }
 0x5bc   :  { %4975 = vmatmul.mubr.msk.f32.vlgmr.msra.gmra.mrb[14].mxu0 %vm211_vm3, %v1464_v23 }
 0x5bd   :  { %5445 = vmatpush3.bf16.msra.mxu0 %v6052_v35  ;;  %4996 = vmatprep.mubr.msk.f32.mxu0 %vm5891_vm0, %v5892_v13 }
 0x5be   :  { %5446 = vmatprep.subr.bf16.mxu0 %v5888_v10 }
 0x5c1   :  { %5448 = vmatpush3.bf16.msra.mxu0 %v6058_v42 }
 0x5c2   :  { %5455 = vmatprep.subr.bf16.mxu0 %v5888_v10 }
 0x687   :  { %v1535_v24 = vpop.f32.mrb[12].mxu0  ;;  %v1605_v26 = vpop.f32.mrb[22].mxu1 }
 0x688   :  { %v1680_v27 = vadd.f32 %v1679_v25, %v1535_v24  ;;  %v4954_v28 = vpop.f32.mrb[13].mxu0  ;;  %v4965_v29 = vpop.f32.mrb[23].mxu1  ;;  %v1688_v32 = vadd.f32 %v1687_v31, %v1605_v26 }
 0x68a   :  { %v4435_v30 = vmul.f32 -1.442695, %v1680_v27  ;;  %v4436_v33 = vmul.f32 -1.442695, %v1688_v32  ;;  %v2181_v27 = vld [vmem:[#allocation2] sm:$0xff] }
 0x68c   :  { %5745 = vpow2.f32 %v4435_v30 }
 0x68d   :  { %5747 = vpow2.f32 %v4436_v33 }
 0x68f   :  { %v1675_v34 = vpop.f32.mrb[14].mxu0 }
 0x690   :  { %v4976_v36 = vpop.f32.mrb[15].mxu0  ;;  %v1676_v41 = vadd.f32 %v6094_v63, %v1675_v34 }
 0x696   :  { %v5746_v37 = vpop.eup %5745 }
 0x697   :  { %v1684_v38 = vadd.f32 1.0, %v5746_v37  ;;  %v5748_v39 = vpop.eup %5747 }
 0x698   :  { %v1692_v40 = vadd.f32 1.0, %v5748_v39 }
 0x699   :  { %5749 = vrcp.f32 %v1684_v38 }
 0x69a   :  { %5751 = vrcp.f32 %v1692_v40 }
 0x6a3   :  { %v5750_v44 = vpop.eup %5749 }
 0x6a4   :  { %v1696_v45 = vmul.f32 %v5750_v44, %v1676_v41  ;;  %v5752_v49 = vpop.eup %5751 }
 0x6a5   :  { %v1699_v50 = vsub.f32 1.0, %v5752_v49  ;;  %v1701_v53 = vmul.f32 %v5752_v49, %v1464_v23  ;;  %v2155_v49 = vld [vmem:[#allocation3 + $0xe] sm:$0x3] }
 0x6a6   :  { %v1697_v48 = vadd.f32 %v1696_v45, %v1695_v47 }
 0x6a8   :  { %5753 = vtanh.f32 %v1697_v48 }
 0x6b2   :  { %v5754_v51 = vpop.eup %5753 }
 0x6b3   :  { %v1700_v52 = vmul.f32 %v5754_v51, %v1699_v50 }
 0x6b5   :  { %v1702_v54 = vadd.f32 %v1701_v53, %v1700_v52 }
 0x6b7   :  { %1703 = vst.msk [vmem:[#allocation2 + $0xa] sm:$0x3] %vm512_vm4, %v1702_v54  ;;  %4986 = vmatmul.mubr.msk.f32.vlgmr.msra.gmra.mrb[24].mxu1 %vm211_vm3, %v1702_v54  ;;  %4997 = vmatmul.mubr.msk.f32.vlgmr.msra.gmra.mrb[16].mxu0 %vm211_vm3, %v1702_v54 }
 0x6b8   :  { %5451 = vmatpush3.bf16.msra.mxu1 %v6060_v43  ;;  %5007 = vmatprep.mubr.msk.f32.mxu1 %vm5891_vm0, %v5892_v13 }
 0x6b9   :  { %5452 = vmatprep.subr.bf16.mxu1 %v5888_v10  ;;  %5457 = vmatpush3.bf16.msra.mxu0 %v5968_v2  ;;  %v6240_v2 = vld [vmem:[%s6535_s6] sm:$0xff]  }
 0x6ba   :  { %5458 = vmatprep.subr.bf16.mxu0 %v5888_v10  ;;  %5018 = vmatprep.mubr.msk.f32.mxu0 %vm5891_vm0, %v5892_v13  ;;  %v4509_v55 = vunpack.c.l.bf16 %v6240_v2 }
 0x6bc   :  { %5454 = vmatpush3.bf16.msra.mxu1 %v6067_v46 }
 0x6bd   :  { %5461 = vmatprep.subr.bf16.mxu1 %v5888_v10  ;;  %5460 = vmatpush3.bf16.msra.mxu0 %v5978_v6  ;;  %v6245_v6 = vld [vmem:[%s6535_s6 + $0x8] sm:$0xff]  }
 0x6be   :  { %5467 = vmatprep.subr.bf16.mxu0 %v5888_v10  ;;  %v4513_v56 = vunpack.c.l.bf16 %v6245_v6  ;;  %v4514_v57 = vunpack.c.h.bf16 %v6245_v6 }
 0x6bf   :  { %5008 = vmatmul.mubr.msk.f32.vlgmr.msra.gmra.mrb[26].mxu1 %vm211_vm3, %v1702_v54 }
 0x6c0   :  { %5463 = vmatpush3.bf16.msra.mxu1 %v6052_v35  ;;  %5029 = vmatprep.mubr.msk.f32.mxu1 %vm5891_vm0, %v5892_v13  ;;  %v4510_v35 = vunpack.c.h.bf16 %v6240_v2 }
 0x6c1   :  { %5464 = vmatprep.subr.bf16.mxu1 %v5888_v10 }
 0x6c2   :  { %v5662_v58 = vpack.i.bf16 %v4510_v35, %v4509_v55  ;;  %v2163_v55 = vld [vmem:[#allocation4 + $0xe] sm:$0x3] }
 0x6c4   :  { %5466 = vmatpush3.bf16.msra.mxu1 %v6058_v42  ;;  %v5667_v42 = vpack.i.bf16 %v4514_v57, %v4513_v56  ;;  %5663 = vrot.lane.b32.xlu0 %v5662_v58, %s5889_s29 }
 0x6c6   :  { %5668 = vrot.lane.b32.xlu1 %v5667_v42, %s5889_s29 }
 0x6c8   :  { %5673 = vrot.lane.b32.xlu0 %v5662_v58, %s5890_s2 }
 0x6ca   :  { %5678 = vrot.lane.b32.xlu1 %v5667_v42, %s5890_s2 }
 0x736   :  { %v5664_v28 = vpop.permute.xlu0 %5663 }
 0x737   :  { %v5666_v38 = vunpack.i.h.bf16 %v5664_v28  ;;  %v5665_v39 = vunpack.i.l.bf16 %v5664_v28  ;;  %v6338_v28 = vld [vmem:[%s6537_s8] ss:$0 sm:$0xff] }
 0x738   :  { %v5669_v29 = vpop.permute.xlu1 %5668 }
 0x739   :  { %v6295_v41 = vpack.c.bf16 %v5666_v38, %v5665_v39  ;;  %v5671_v44 = vunpack.i.h.bf16 %v5669_v29  ;;  %v5670_v45 = vunpack.i.l.bf16 %v5669_v29 }
 0x73a   :  { %v5674_v30 = vpop.permute.xlu0 %5673 }
 0x73b   :  { %v5676_v32 = vunpack.i.h.bf16 %v5674_v30  ;;  %v5675_v33 = vunpack.i.l.bf16 %v5674_v30  ;;  %v6300_v47 = vpack.c.bf16 %v5671_v44, %v5670_v45 }
 0x73c   :  { %v5679_v31 = vpop.permute.xlu1 %5678 }
 0x73d   :  { %v5681_v34 = vunpack.i.h.bf16 %v5679_v31  ;;  %v5680_v36 = vunpack.i.l.bf16 %v5679_v31  ;;  %v6289_v37 = vpack.c.bf16 %v5676_v32, %v5675_v33 }
 0x73f   :  { %v6291_v40 = vpack.c.bf16 %v5681_v34, %v5680_v36 }
 0x78a   :  { %v1773_v59 = vpop.f32.mrb[24].mxu1  ;;  %v1843_v61 = vpop.f32.mrb[16].mxu0 }
 0x78b   :  { %v1918_v62 = vadd.f32 %v1917_v60, %v1773_v59  ;;  %v4987_v0 = vpop.f32.mrb[25].mxu1  ;;  %v4998_v1 = vpop.f32.mrb[17].mxu0  ;;  %v1926_v5 = vadd.f32 %v1925_v4, %v1843_v61 }
 0x78d   :  { %v4440_v3 = vmul.f32 -1.442695, %v1918_v62  ;;  %v4441_v7 = vmul.f32 -1.442695, %v1926_v5 }
 0x78f   :  { %5755 = vpow2.f32 %v4440_v3  ;;  %v2171_v3 = vld [vmem:[#allocation5 + $0xe] sm:$0x3] }
 0x790   :  { %5757 = vpow2.f32 %v4441_v7 }
 0x792   :  { %v1913_v8 = vpop.f32.mrb[26].mxu1 }
 0x793   :  { %v5009_v9 = vpop.f32.mrb[27].mxu1  ;;  %v1914_v16 = vadd.f32 %v6094_v63, %v1913_v8 }
 0x799   :  { %v5756_v11 = vpop.eup %5755 }
 0x79a   :  { %v1922_v12 = vadd.f32 1.0, %v5756_v11  ;;  %v5758_v14 = vpop.eup %5757 }
 0x79b   :  { %v1930_v15 = vadd.f32 1.0, %v5758_v14 }
 0x79c   :  { %5759 = vrcp.f32 %v1922_v12 }
 0x79d   :  { %5761 = vrcp.f32 %v1930_v15 }
 0x7a6   :  { %v5760_v17 = vpop.eup %5759 }
 0x7a7   :  { %v1934_v18 = vmul.f32 %v5760_v17, %v1914_v16  ;;  %v5762_v21 = vpop.eup %5761 }
 0x7a8   :  { %v1937_v22 = vsub.f32 1.0, %v5762_v21  ;;  %v1939_v25 = vmul.f32 %v5762_v21, %v1702_v54 }
 0x7a9   :  { %v1935_v20 = vadd.f32 %v1934_v18, %v1933_v19  ;;  %v4447_v18 = vld [vmem:[%s6536_s7] ss:$0 sm:$0xff] }
 0x7ab   :  { %5763 = vtanh.f32 %v1935_v20 }
 0x7b5   :  { %v5764_v23 = vpop.eup %5763 }
 0x7b6   :  { %v1938_v24 = vmul.f32 %v5764_v23, %v1937_v22 }
 0x7b8   :  { %v6256_v26 = vadd.f32 %v1939_v25, %v1938_v24 }
 0x7ba   :  { %1941 = vst.msk [vmem:[#allocation2 + $0xc] sm:$0x3] %vm512_vm4, %v6256_v26  ;;  %5019 = vmatmul.mubr.msk.f32.vlgmr.msra.gmra.mrb[18].mxu0 %vm211_vm3, %v6256_v26  ;;  %5030 = vmatmul.mubr.msk.f32.vlgmr.msra.gmra.mrb[28].mxu1 %vm211_vm3, %v6256_v26 }
 0x7bb   :  { %5469 = vmatpush3.bf16.msra.mxu0 %v6060_v43  ;;  %5051 = vmatprep.mubr.msk.f32.mxu1 %vm211_vm3, %v2181_v27  ;;  %v4500_v43 = vld [vmem:[%s6534_s5] sm:$0xff]  }
 0x7bc   :  { %5470 = vmatprep.subr.bf16.mxu0 %v5888_v10  ;;  %5040 = vmatprep.mubr.msk.f32.mxu0 %vm5891_vm0, %v5892_v13 }
 0x7bd   :  { %5474 = vmatprep.subr.bf16.mxu1 %v4500_v43 }
 0x7be   :  { %5476 = vmatpush3.bf16.msra.mxu1 %v4500_v43 }
 0x7bf   :  { %5472 = vmatpush3.bf16.msra.mxu0 %v6067_v46  ;;  %v4524_v46 = vld [vmem:[%s6534_s5 + $0x8] sm:$0xff]  }
 0x7c0   :  { %5481 = vmatprep.subr.bf16.mxu0 %v5888_v10  ;;  %5478 = vmatprep.subr.bf16.mxu1 %v4524_v46 }
 0x7c2   :  { %5041 = vmatmul.mubr.msk.f32.vlgmr.msra.gmra.mrb[20].mxu0 %vm211_vm3, %v6256_v26  ;;  %5480 = vmatpush3.bf16.msra.mxu1 %v4524_v46 }
 0x7c3   :  { %5483 = vmatpush3.bf16.msra.mxu0 %v6240_v2  ;;  %5062 = vmatprep.mubr.msk.f32.mxu0 %vm5891_vm0, %v5892_v13 }
 0x7c4   :  { %5484 = vmatprep.subr.bf16.mxu0 %v5888_v10  ;;  %5487 = vmatprep.subr.bf16.mxu1 %v5888_v10 }
 0x7c7   :  { %5486 = vmatpush3.bf16.msra.mxu0 %v6245_v6 }
 0x7c8   :  { %5493 = vmatprep.subr.bf16.mxu0 %v5888_v10 }
 0x7ca   :  { %5063 = vmatmul.mubr.f32.vlgmr.msra.gmra.mrb[22].mxu0 %v5892_v13 }
 0x7cb   :  { %5084 = vmatprep.mubr.msk.f32.mxu0 %vm5891_vm0, %v5892_v13  ;;  %5495 = vmatpush3.bf16.msra.mxu0 %v6289_v37 }
 0x7cc   :  { %5496 = vmatprep.subr.bf16.mxu0 %v5888_v10 }
 0x7cf   :  { %5498 = vmatpush3.bf16.msra.mxu0 %v6291_v40 }
 0x7d0   :  { %5505 = vmatprep.subr.bf16.mxu0 %v5888_v10 }
 0x7d2   :  { %5085 = vmatmul.mubr.f32.vlgmr.msra.gmra.mrb[24].mxu0 %v5892_v13 }
 0x7d3   :  { %5507 = vmatpush3.bf16.msra.mxu0 %v6295_v41  ;;  %5106 = vmatprep.mubr.msk.f32.mxu0 %vm5891_vm0, %v5892_v13 }
 0x7d4   :  { %5508 = vmatprep.subr.bf16.mxu0 %v5888_v10 }
 0x7d7   :  { %5510 = vmatpush3.bf16.msra.mxu0 %v6300_v47 }
 0x7d8   :  { %5517 = vmatprep.subr.bf16.mxu0 %v5888_v10 }
 0x88d   :  { %v2011_v48 = vpop.f32.mrb[18].mxu0  ;;  %v2081_v50 = vpop.f32.mrb[28].mxu1 }
 0x88e   :  { %v2156_v51 = vadd.f32 %v2155_v49, %v2011_v48  ;;  %v5020_v52 = vpop.f32.mrb[19].mxu0  ;;  %v5031_v53 = vpop.f32.mrb[29].mxu1  ;;  %v2164_v35 = vadd.f32 %v2163_v55, %v2081_v50 }
 0x890   :  { %v4445_v54 = vmul.f32 -1.442695, %v2156_v51  ;;  %v4446_v56 = vmul.f32 -1.442695, %v2164_v35 }
 0x892   :  { %5765 = vpow2.f32 %v4445_v54 }
 0x893   :  { %5767 = vpow2.f32 %v4446_v56 }
 0x895   :  { %v2151_v57 = vpop.f32.mrb[20].mxu0 }
 0x896   :  { %v5042_v58 = vpop.f32.mrb[21].mxu0  ;;  %v2152_v62 = vadd.f32 %v6094_v63, %v2151_v57 }
 0x89c   :  { %v5766_v42 = vpop.eup %5765 }
 0x89d   :  { %v2160_v59 = vadd.f32 1.0, %v5766_v42  ;;  %v5768_v60 = vpop.eup %5767  ;;  %v2374_v63 = vpop.f32.mrb[22].mxu0 }
 0x89e   :  { %v2168_v61 = vadd.f32 1.0, %v5768_v60  ;;  %v5064_v15 = vpop.f32.mrb[23].mxu0 }
 0x89f   :  { %5769 = vrcp.f32 %v2160_v59 }
 0x8a0   :  { %5771 = vrcp.f32 %v2168_v61 }
 0x8a5   :  { %v2548_v16 = vpop.f32.mrb[24].mxu0 }
 0x8a6   :  { %v5086_v17 = vpop.f32.mrb[25].mxu0  ;;  %v2549_v29 = vadd.f32 %v6338_v28, %v2548_v16 }
 0x8a9   :  { %v5770_v0 = vpop.eup %5769 }
 0x8aa   :  { %v2172_v1 = vmul.f32 %v5770_v0, %v2152_v62  ;;  %v5772_v5 = vpop.eup %5771 }
 0x8ab   :  { %v2175_v7 = vsub.f32 1.0, %v5772_v5  ;;  %v2177_v9 = vmul.f32 %v5772_v5, %v6256_v26 }
 0x8ac   :  { %v2173_v4 = vadd.f32 %v2172_v1, %v2171_v3 }
 0x8ae   :  { %5773 = vtanh.f32 %v2173_v4 }
 0x8b8   :  { %v5774_v8 = vpop.eup %5773 }
 0x8b9   :  { %v2176_v11 = vmul.f32 %v5774_v8, %v2175_v7 }
 0x8bb   :  { %v2178_v12 = vadd.f32 %v2177_v9, %v2176_v11 }
 0x8bd   :  { %2179 = vst.msk [vmem:[#allocation2 + $0xe] sm:$0x3] %vm512_vm4, %v2178_v12  ;;  %2180 = vst.msk [vmem:[#allocation6] sm:$0x3] %vm512_vm4, %v2178_v12 }
 0x8c4   :  { %v2182_v14 = vld [vmem:[#allocation2 + $0x8] sm:$0xff] }
 0x8c5   :  { %5052 = vmatmul.mubr.msk.f32.vlgmr.msra.gmra.mrb[30].mxu1 %vm211_vm3, %v2182_v14 }
 0x8c6   :  { %5489 = vmatpush3.bf16.msra.mxu1 %v6295_v41  ;;  %5073 = vmatprep.mubr.msk.f32.mxu1 %vm5891_vm0, %v5892_v13 }
 0x8c7   :  { %5490 = vmatprep.subr.bf16.mxu1 %v5888_v10 }
 0x8ca   :  { %5492 = vmatpush3.bf16.msra.mxu1 %v6300_v47 }
 0x8cb   :  { %5499 = vmatprep.subr.bf16.mxu1 %v5888_v10 }
 0x8cd   :  { %5074 = vmatmul.mubr.f32.vlgmr.msra.gmra.mrb[32].mxu1 %v5892_v13 }
 0x8ce   :  { %5501 = vmatpush3.bf16.msra.mxu1 %v6240_v2  ;;  %5095 = vmatprep.mubr.msk.f32.mxu1 %vm5891_vm0, %v5892_v13 }
 0x8cf   :  { %5502 = vmatprep.subr.bf16.mxu1 %v5888_v10 }
 0x8d2   :  { %5504 = vmatpush3.bf16.msra.mxu1 %v6245_v6 }
 0x8d3   :  { %5511 = vmatprep.subr.bf16.mxu1 %v5888_v10 }
 0x998   :  { %v5053_v19 = vpop.f32.mrb[30].mxu1 }
 0x999   :  { %v2276_v20 = vadd.f32 %v5053_v19, %v4447_v18  ;;  %v2270_v21 = vpop.f32.mrb[31].mxu1 }
 0x99a   :  { %v2271_v22 = vadd.f32 %v4447_v18, %v2270_v21 }
 0x99b   :  { %2280 = vst.msk [vmem:[#allocation3 + $0x8] sm:$0xff] %vm211_vm3, %v2276_v20 }
 0x99c   :  { %2279 = vst.msk [vmem:[#allocation3] sm:$0xff] %vm211_vm3, %v2271_v22  ;;  %2291 = vrot.lane.b32.xlu1 %v2271_v22, %s5890_s2  ;;  %2283 = vrot.lane.b32.xlu0 %v2271_v22, %s5889_s29 }
 0x9a0   :  { %2293 = vrot.lane.b32.xlu1 %v2276_v20, %s5890_s2  ;;  %2285 = vrot.lane.b32.xlu0 %v2276_v20, %s5889_s29  ;;  %v2460_v23 = vpop.f32.mrb[32].mxu1 }
 0x9a1   :  { %v5075_v24 = vpop.f32.mrb[33].mxu1 }
 0x9a3   :  { %v2552_v25 = vld [vmem:[#allocation3] sm:$0x3]  ;;  %v2790_v57 = vld [vmem:[#allocation3 + $0x2] sm:$0x3] }
 0x9a4   :  { %v2553_v26 = vadd.f32 %v2552_v25, %v2374_v63 }
 0x9a6   :  { %v4451_v27 = vmul.f32 -1.442695, %v2553_v26 }
 0x9a8   :  { %5775 = vpow2.f32 %v4451_v27 }
 0x9b2   :  { %v5776_v43 = vpop.eup %5775 }
 0x9b3   :  { %v2557_v46 = vadd.f32 1.0, %v5776_v43 }
 0x9b5   :  { %5777 = vrcp.f32 %v2557_v46 }
 0x9bf   :  { %v5778_v30 = vpop.eup %5777 }
 0x9c0   :  { %v2569_v31 = vmul.f32 %v5778_v30, %v2549_v29 }
 0xa0e   :  { %v2292_v32 = vpop.permute.xlu1 %2291  ;;  %v2284_v33 = vpop.permute.xlu0 %2283 }
 0xa0f   :  { %2297 = vst.msk [vmem:[#allocation5] sm:$0xff] %vm211_vm3, %v2292_v32  ;;  %2289 = vst.msk [vmem:[#allocation4] sm:$0xff] %vm211_vm3, %v2284_v33 }
 0xa12   :  { %v2294_v34 = vpop.permute.xlu1 %2293  ;;  %v2286_v36 = vpop.permute.xlu0 %2285 }
 0xa13   :  { %2298 = vst.msk [vmem:[#allocation5 + $0x8] sm:$0xff] %vm211_vm3, %v2294_v34  ;;  %2290 = vst.msk [vmem:[#allocation4 + $0x8] sm:$0xff] %vm211_vm3, %v2286_v36 }
 0xa16   :  { %v2560_v38 = vld [vmem:[#allocation4] sm:$0x3]  ;;  %v2568_v45 = vld [vmem:[#allocation5] sm:$0x3]  ;;  %v2798_v62 = vld [vmem:[#allocation4 + $0x2] sm:$0x3] }
 0xa17   :  { %v2561_v39 = vadd.f32 %v2560_v38, %v2460_v23  ;;  %v2570_v50 = vadd.f32 %v2569_v31, %v2568_v45  ;;  %v2806_v63 = vld [vmem:[#allocation5 + $0x2] sm:$0x3]  ;;  %v3028_v23 = vld [vmem:[#allocation3 + $0x4] sm:$0x3]  ;;  %v3036_v46 = vld [vmem:[#allocation4 + $0x4] sm:$0x3] }
 0xa19   :  { %v4452_v44 = vmul.f32 -1.442695, %v2561_v39 }
 0xa1b   :  { %5779 = vpow2.f32 %v4452_v44 }
 0xa25   :  { %v5780_v48 = vpop.eup %5779 }
 0xa26   :  { %v2565_v49 = vadd.f32 1.0, %v5780_v48  ;;  %v3044_v48 = vld [vmem:[#allocation5 + $0x4] sm:$0x3] }
 0xa28   :  { %5781 = vrcp.f32 %v2565_v49 }
 0xa29   :  { %5783 = vtanh.f32 %v2570_v50 }
 0xa32   :  { %v5782_v51 = vpop.eup %5781 }
 0xa33   :  { %v2572_v52 = vsub.f32 1.0, %v5782_v51  ;;  %v5784_v53 = vpop.eup %5783  ;;  %v2574_v55 = vmul.f32 0.0, %v5782_v51 }
 0xa35   :  { %v2573_v54 = vmul.f32 %v5784_v53, %v2572_v52 }
 0xa37   :  { %v2575_v35 = vadd.f32 %v2574_v55, %v2573_v54 }
 0xa39   :  { %2576 = vst.msk [vmem:[#allocation2] sm:$0x3] %vm512_vm4, %v2575_v35  ;;  %5096 = vmatmul.mubr.msk.f32.vlgmr.msra.gmra.mrb[34].mxu1 %vm211_vm3, %v2575_v35  ;;  %5107 = vmatmul.mubr.msk.f32.vlgmr.msra.gmra.mrb[26].mxu0 %vm211_vm3, %v2575_v35 }
 0xa3a   :  { %5513 = vmatpush3.bf16.msra.mxu1 %v6289_v37  ;;  %5117 = vmatprep.mubr.msk.f32.mxu1 %vm5891_vm0, %v5892_v13 }
 0xa3b   :  { %5514 = vmatprep.subr.bf16.mxu1 %v5888_v10  ;;  %5519 = vmatpush3.bf16.msra.mxu0 %v6240_v2 }
 0xa3c   :  { %5520 = vmatprep.subr.bf16.mxu0 %v5888_v10  ;;  %5128 = vmatprep.mubr.msk.f32.mxu0 %vm5891_vm0, %v5892_v13 }
 0xa3e   :  { %5516 = vmatpush3.bf16.msra.mxu1 %v6291_v40 }
 0xa3f   :  { %5523 = vmatprep.subr.bf16.mxu1 %v5888_v10  ;;  %5522 = vmatpush3.bf16.msra.mxu0 %v6245_v6 }
 0xa40   :  { %5529 = vmatprep.subr.bf16.mxu0 %v5888_v10 }
 0xa41   :  { %5118 = vmatmul.mubr.msk.f32.vlgmr.msra.gmra.mrb[36].mxu1 %vm211_vm3, %v2575_v35 }
 0xa42   :  { %5525 = vmatpush3.bf16.msra.mxu1 %v6295_v41  ;;  %5139 = vmatprep.mubr.msk.f32.mxu1 %vm5891_vm0, %v5892_v13 }
 0xa43   :  { %5526 = vmatprep.subr.bf16.mxu1 %v5888_v10 }
 0xa46   :  { %5528 = vmatpush3.bf16.msra.mxu1 %v6300_v47 }
 0xa47   :  { %5535 = vmatprep.subr.bf16.mxu1 %v5888_v10 }
 0xb0c   :  { %v2646_v56 = vpop.f32.mrb[34].mxu1  ;;  %v2716_v58 = vpop.f32.mrb[26].mxu0 }
 0xb0d   :  { %v2791_v42 = vadd.f32 %v2790_v57, %v2646_v56  ;;  %v5097_v59 = vpop.f32.mrb[35].mxu1  ;;  %v5108_v60 = vpop.f32.mrb[27].mxu0  ;;  %v2799_v0 = vadd.f32 %v2798_v62, %v2716_v58  ;;  %v3266_v56 = vld [vmem:[#allocation3 + $0x6] sm:$0x3] }
 0xb0f   :  { %v4456_v61 = vmul.f32 -1.442695, %v2791_v42  ;;  %v4457_v1 = vmul.f32 -1.442695, %v2799_v0 }
 0xb11   :  { %5785 = vpow2.f32 %v4456_v61  ;;  %v3274_v61 = vld [vmem:[#allocation4 + $0x6] sm:$0x3] }
 0xb12   :  { %5787 = vpow2.f32 %v4457_v1 }
 0xb14   :  { %v2786_v3 = vpop.f32.mrb[36].mxu1 }
 0xb15   :  { %v5119_v4 = vpop.f32.mrb[37].mxu1  ;;  %v2787_v11 = vadd.f32 %v6338_v28, %v2786_v3 }
 0xb1b   :  { %v5786_v5 = vpop.eup %5785 }
 0xb1c   :  { %v2795_v7 = vadd.f32 1.0, %v5786_v5  ;;  %v5788_v8 = vpop.eup %5787 }
 0xb1d   :  { %v2803_v9 = vadd.f32 1.0, %v5788_v8 }
 0xb1e   :  { %5789 = vrcp.f32 %v2795_v7 }
 0xb1f   :  { %5791 = vrcp.f32 %v2803_v9 }
 0xb28   :  { %v5790_v12 = vpop.eup %5789 }
 0xb29   :  { %v2807_v14 = vmul.f32 %v5790_v12, %v2787_v11  ;;  %v5792_v16 = vpop.eup %5791 }
 0xb2a   :  { %v2810_v17 = vsub.f32 1.0, %v5792_v16  ;;  %v2812_v20 = vmul.f32 %v5792_v16, %v2575_v35 }
 0xb2b   :  { %v2808_v15 = vadd.f32 %v2807_v14, %v2806_v63  ;;  %v3282_v14 = vld [vmem:[#allocation5 + $0x6] sm:$0x3] }
 0xb2d   :  { %5793 = vtanh.f32 %v2808_v15 }
 0xb37   :  { %v5794_v18 = vpop.eup %5793 }
 0xb38   :  { %v2811_v19 = vmul.f32 %v5794_v18, %v2810_v17 }
 0xb3a   :  { %v2813_v21 = vadd.f32 %v2812_v20, %v2811_v19 }
 0xb3c   :  { %2814 = vst.msk [vmem:[#allocation2 + $0x2] sm:$0x3] %vm512_vm4, %v2813_v21  ;;  %5129 = vmatmul.mubr.msk.f32.vlgmr.msra.gmra.mrb[28].mxu0 %vm211_vm3, %v2813_v21  ;;  %5140 = vmatmul.mubr.msk.f32.vlgmr.msra.gmra.mrb[38].mxu1 %vm211_vm3, %v2813_v21 }
 0xb3d   :  { %5531 = vmatpush3.bf16.msra.mxu0 %v6289_v37  ;;  %5150 = vmatprep.mubr.msk.f32.mxu0 %vm5891_vm0, %v5892_v13 }
 0xb3e   :  { %5532 = vmatprep.subr.bf16.mxu0 %v5888_v10  ;;  %5537 = vmatpush3.bf16.msra.mxu1 %v6240_v2 }
 0xb3f   :  { %5538 = vmatprep.subr.bf16.mxu1 %v5888_v10  ;;  %5161 = vmatprep.mubr.msk.f32.mxu1 %vm5891_vm0, %v5892_v13 }
 0xb41   :  { %5534 = vmatpush3.bf16.msra.mxu0 %v6291_v40 }
 0xb42   :  { %5541 = vmatprep.subr.bf16.mxu0 %v5888_v10  ;;  %5540 = vmatpush3.bf16.msra.mxu1 %v6245_v6 }
 0xb43   :  { %5547 = vmatprep.subr.bf16.mxu1 %v5888_v10 }
 0xb44   :  { %5151 = vmatmul.mubr.msk.f32.vlgmr.msra.gmra.mrb[30].mxu0 %vm211_vm3, %v2813_v21 }
 0xb45   :  { %5543 = vmatpush3.bf16.msra.mxu0 %v6295_v41  ;;  %5172 = vmatprep.mubr.msk.f32.mxu0 %vm5891_vm0, %v5892_v13 }
 0xb46   :  { %5544 = vmatprep.subr.bf16.mxu0 %v5888_v10 }
 0xb49   :  { %5546 = vmatpush3.bf16.msra.mxu0 %v6300_v47 }
 0xb4a   :  { %5553 = vmatprep.subr.bf16.mxu0 %v5888_v10 }
 0xc0f   :  { %v2884_v22 = vpop.f32.mrb[28].mxu0  ;;  %v2954_v24 = vpop.f32.mrb[38].mxu1 }
 0xc10   :  { %v3029_v25 = vadd.f32 %v3028_v23, %v2884_v22  ;;  %v5130_v26 = vpop.f32.mrb[29].mxu0  ;;  %v5141_v27 = vpop.f32.mrb[39].mxu1  ;;  %v3037_v29 = vadd.f32 %v3036_v46, %v2954_v24  ;;  %v3504_v22 = vld [vmem:[#allocation3 + $0x8] sm:$0x3] }
 0xc12   :  { %v4461_v43 = vmul.f32 -1.442695, %v3029_v25  ;;  %v4462_v30 = vmul.f32 -1.442695, %v3037_v29 }
 0xc14   :  { %5795 = vpow2.f32 %v4461_v43  ;;  %v3512_v43 = vld [vmem:[#allocation4 + $0x8] sm:$0x3] }
 0xc15   :  { %5797 = vpow2.f32 %v4462_v30 }
 0xc17   :  { %v3024_v31 = vpop.f32.mrb[30].mxu0 }
 0xc18   :  { %v5152_v32 = vpop.f32.mrb[31].mxu0  ;;  %v3025_v39 = vadd.f32 %v6338_v28, %v3024_v31 }
 0xc1e   :  { %v5796_v33 = vpop.eup %5795 }
 0xc1f   :  { %v3033_v34 = vadd.f32 1.0, %v5796_v33  ;;  %v5798_v36 = vpop.eup %5797 }
 0xc20   :  { %v3041_v38 = vadd.f32 1.0, %v5798_v36 }
 0xc21   :  { %5799 = vrcp.f32 %v3033_v34 }
 0xc22   :  { %5801 = vrcp.f32 %v3041_v38 }
 0xc2b   :  { %v5800_v44 = vpop.eup %5799 }
 0xc2c   :  { %v3045_v45 = vmul.f32 %v5800_v44, %v3025_v39  ;;  %v5802_v50 = vpop.eup %5801 }
 0xc2d   :  { %v3048_v51 = vsub.f32 1.0, %v5802_v50  ;;  %v3050_v54 = vmul.f32 %v5802_v50, %v2813_v21 }
 0xc2e   :  { %v3046_v49 = vadd.f32 %v3045_v45, %v3044_v48  ;;  %v3520_v45 = vld [vmem:[#allocation5 + $0x8] sm:$0x3] }
 0xc30   :  { %5803 = vtanh.f32 %v3046_v49 }
 0xc3a   :  { %v5804_v52 = vpop.eup %5803 }
 0xc3b   :  { %v3049_v53 = vmul.f32 %v5804_v52, %v3048_v51 }
 0xc3d   :  { %v3051_v55 = vadd.f32 %v3050_v54, %v3049_v53 }
 0xc3f   :  { %3052 = vst.msk [vmem:[#allocation2 + $0x4] sm:$0x3] %vm512_vm4, %v3051_v55  ;;  %5162 = vmatmul.mubr.msk.f32.vlgmr.msra.gmra.mrb[40].mxu1 %vm211_vm3, %v3051_v55  ;;  %5173 = vmatmul.mubr.msk.f32.vlgmr.msra.gmra.mrb[32].mxu0 %vm211_vm3, %v3051_v55 }
 0xc40   :  { %5549 = vmatpush3.bf16.msra.mxu1 %v6289_v37  ;;  %5183 = vmatprep.mubr.msk.f32.mxu1 %vm5891_vm0, %v5892_v13 }
 0xc41   :  { %5550 = vmatprep.subr.bf16.mxu1 %v5888_v10  ;;  %5555 = vmatpush3.bf16.msra.mxu0 %v6240_v2 }
 0xc42   :  { %5556 = vmatprep.subr.bf16.mxu0 %v5888_v10  ;;  %5194 = vmatprep.mubr.msk.f32.mxu0 %vm5891_vm0, %v5892_v13 }
 0xc44   :  { %5552 = vmatpush3.bf16.msra.mxu1 %v6291_v40 }
 0xc45   :  { %5559 = vmatprep.subr.bf16.mxu1 %v5888_v10  ;;  %5558 = vmatpush3.bf16.msra.mxu0 %v6245_v6 }
 0xc46   :  { %5565 = vmatprep.subr.bf16.mxu0 %v5888_v10 }
 0xc47   :  { %5184 = vmatmul.mubr.msk.f32.vlgmr.msra.gmra.mrb[42].mxu1 %vm211_vm3, %v3051_v55 }
 0xc48   :  { %5561 = vmatpush3.bf16.msra.mxu1 %v6295_v41  ;;  %5205 = vmatprep.mubr.msk.f32.mxu1 %vm5891_vm0, %v5892_v13 }
 0xc49   :  { %5562 = vmatprep.subr.bf16.mxu1 %v5888_v10 }
 0xc4c   :  { %5564 = vmatpush3.bf16.msra.mxu1 %v6300_v47 }
 0xc4d   :  { %5571 = vmatprep.subr.bf16.mxu1 %v5888_v10 }
 0xd12   :  { %v3122_v35 = vpop.f32.mrb[40].mxu1  ;;  %v3192_v57 = vpop.f32.mrb[32].mxu0 }
 0xd13   :  { %v3267_v58 = vadd.f32 %v3266_v56, %v3122_v35  ;;  %v5163_v42 = vpop.f32.mrb[41].mxu1  ;;  %v5174_v59 = vpop.f32.mrb[33].mxu0  ;;  %v3275_v62 = vadd.f32 %v3274_v61, %v3192_v57  ;;  %v3742_v35 = vld [vmem:[#allocation3 + $0xa] sm:$0x3] }
 0xd15   :  { %v4466_v60 = vmul.f32 -1.442695, %v3267_v58  ;;  %v4467_v0 = vmul.f32 -1.442695, %v3275_v62 }
 0xd17   :  { %5805 = vpow2.f32 %v4466_v60  ;;  %v3750_v60 = vld [vmem:[#allocation4 + $0xa] sm:$0x3] }
 0xd18   :  { %5807 = vpow2.f32 %v4467_v0 }
 0xd1a   :  { %v3262_v1 = vpop.f32.mrb[42].mxu1 }
 0xd1b   :  { %v5185_v3 = vpop.f32.mrb[43].mxu1  ;;  %v3263_v9 = vadd.f32 %v6338_v28, %v3262_v1 }
 0xd21   :  { %v5806_v4 = vpop.eup %5805 }
 0xd22   :  { %v3271_v5 = vadd.f32 1.0, %v5806_v4  ;;  %v5808_v7 = vpop.eup %5807 }
 0xd23   :  { %v3279_v8 = vadd.f32 1.0, %v5808_v7 }
 0xd24   :  { %5809 = vrcp.f32 %v3271_v5 }
 0xd25   :  { %5811 = vrcp.f32 %v3279_v8 }
 0xd2e   :  { %v5810_v11 = vpop.eup %5809 }
 0xd2f   :  { %v3283_v12 = vmul.f32 %v5810_v11, %v3263_v9  ;;  %v5812_v15 = vpop.eup %5811 }
 0xd30   :  { %v3286_v16 = vsub.f32 1.0, %v5812_v15  ;;  %v3288_v19 = vmul.f32 %v5812_v15, %v3051_v55 }
 0xd31   :  { %v3284_v63 = vadd.f32 %v3283_v12, %v3282_v14  ;;  %v3758_v12 = vld [vmem:[#allocation5 + $0xa] sm:$0x3] }
 0xd33   :  { %5813 = vtanh.f32 %v3284_v63 }
 0xd3d   :  { %v5814_v17 = vpop.eup %5813 }
 0xd3e   :  { %v3287_v18 = vmul.f32 %v5814_v17, %v3286_v16 }
 0xd40   :  { %v3289_v20 = vadd.f32 %v3288_v19, %v3287_v18 }
 0xd42   :  { %3290 = vst.msk [vmem:[#allocation2 + $0x6] sm:$0x3] %vm512_vm4, %v3289_v20  ;;  %5195 = vmatmul.mubr.msk.f32.vlgmr.msra.gmra.mrb[34].mxu0 %vm211_vm3, %v3289_v20  ;;  %5206 = vmatmul.mubr.msk.f32.vlgmr.msra.gmra.mrb[44].mxu1 %vm211_vm3, %v3289_v20 }
 0xd43   :  { %5567 = vmatpush3.bf16.msra.mxu0 %v6289_v37  ;;  %5216 = vmatprep.mubr.msk.f32.mxu0 %vm5891_vm0, %v5892_v13 }
 0xd44   :  { %5568 = vmatprep.subr.bf16.mxu0 %v5888_v10  ;;  %5573 = vmatpush3.bf16.msra.mxu1 %v6240_v2 }
 0xd45   :  { %5574 = vmatprep.subr.bf16.mxu1 %v5888_v10  ;;  %5227 = vmatprep.mubr.msk.f32.mxu1 %vm5891_vm0, %v5892_v13 }
 0xd47   :  { %5570 = vmatpush3.bf16.msra.mxu0 %v6291_v40 }
 0xd48   :  { %5577 = vmatprep.subr.bf16.mxu0 %v5888_v10  ;;  %5576 = vmatpush3.bf16.msra.mxu1 %v6245_v6 }
 0xd49   :  { %5583 = vmatprep.subr.bf16.mxu1 %v5888_v10 }
 0xd4a   :  { %5217 = vmatmul.mubr.msk.f32.vlgmr.msra.gmra.mrb[36].mxu0 %vm211_vm3, %v3289_v20 }
 0xd4b   :  { %5579 = vmatpush3.bf16.msra.mxu0 %v6295_v41  ;;  %5238 = vmatprep.mubr.msk.f32.mxu0 %vm5891_vm0, %v5892_v13 }
 0xd4c   :  { %5580 = vmatprep.subr.bf16.mxu0 %v5888_v10 }
 0xd4f   :  { %5582 = vmatpush3.bf16.msra.mxu0 %v6300_v47 }
 0xd50   :  { %5589 = vmatprep.subr.bf16.mxu0 %v5888_v10 }
 0xe15   :  { %v3360_v21 = vpop.f32.mrb[34].mxu0  ;;  %v3430_v23 = vpop.f32.mrb[44].mxu1 }
 0xe16   :  { %v3505_v24 = vadd.f32 %v3504_v22, %v3360_v21  ;;  %v5196_v25 = vpop.f32.mrb[35].mxu0  ;;  %v5207_v26 = vpop.f32.mrb[45].mxu1  ;;  %v3513_v46 = vadd.f32 %v3512_v43, %v3430_v23 }
 0xe17   :  { %v3988_v25 = vld [vmem:[#allocation4 + $0xc] sm:$0x3] }
 0xe18   :  { %v4471_v27 = vmul.f32 -1.442695, %v3505_v24  ;;  %v4472_v29 = vmul.f32 -1.442695, %v3513_v46 }
 0xe1a   :  { %5815 = vpow2.f32 %v4471_v27 }
 0xe1b   :  { %5817 = vpow2.f32 %v4472_v29 }
 0xe1d   :  { %v3500_v30 = vpop.f32.mrb[36].mxu0 }
 0xe1e   :  { %v5218_v31 = vpop.f32.mrb[37].mxu0  ;;  %v3501_v38 = vadd.f32 %v6338_v28, %v3500_v30 }
 0xe24   :  { %v5816_v32 = vpop.eup %5815 }
 0xe25   :  { %v3509_v33 = vadd.f32 1.0, %v5816_v32  ;;  %v5818_v34 = vpop.eup %5817 }
 0xe26   :  { %v3517_v36 = vadd.f32 1.0, %v5818_v34  ;;  %v3996_v34 = vld [vmem:[#allocation5 + $0xc] sm:$0x3] }
 0xe27   :  { %5819 = vrcp.f32 %v3509_v33 }
 0xe28   :  { %5821 = vrcp.f32 %v3517_v36 }
 0xe31   :  { %v5820_v39 = vpop.eup %5819 }
 0xe32   :  { %v3521_v44 = vmul.f32 %v5820_v39, %v3501_v38  ;;  %v5822_v49 = vpop.eup %5821 }
 0xe33   :  { %v3524_v50 = vsub.f32 1.0, %v5822_v49  ;;  %v3526_v53 = vmul.f32 %v5822_v49, %v3289_v20  ;;  %v3980_v20 = vld [vmem:[#allocation3 + $0xc] sm:$0x3] }
 0xe34   :  { %v3522_v48 = vadd.f32 %v3521_v44, %v3520_v45 }
 0xe36   :  { %5823 = vtanh.f32 %v3522_v48 }
 0xe40   :  { %v5824_v51 = vpop.eup %5823 }
 0xe41   :  { %v3525_v52 = vmul.f32 %v5824_v51, %v3524_v50  ;;  %v4253_v50 = vld [vmem:[#allocation2] sm:$0xff] }
 0xe42   :  { %v4516_v51 = vld [vmem:[%s6538_s9] sm:$0xff]  }
 0xe43   :  { %v3527_v54 = vadd.f32 %v3526_v53, %v3525_v52  ;;  %v4526_v52 = vld [vmem:[%s6538_s9 + $0x8] sm:$0xff]  }
 0xe45   :  { %3528 = vst.msk [vmem:[#allocation2 + $0x8] sm:$0x3] %vm512_vm4, %v3527_v54  ;;  %5228 = vmatmul.mubr.msk.f32.vlgmr.msra.gmra.mrb[46].mxu1 %vm211_vm3, %v3527_v54  ;;  %5239 = vmatmul.mubr.msk.f32.vlgmr.msra.gmra.mrb[38].mxu0 %vm211_vm3, %v3527_v54 }
 0xe46   :  { %5585 = vmatpush3.bf16.msra.mxu1 %v6289_v37  ;;  %5249 = vmatprep.mubr.msk.f32.mxu1 %vm5891_vm0, %v5892_v13 }
 0xe47   :  { %5586 = vmatprep.subr.bf16.mxu1 %v5888_v10  ;;  %5591 = vmatpush3.bf16.msra.mxu0 %v6240_v2 }
 0xe48   :  { %5592 = vmatprep.subr.bf16.mxu0 %v5888_v10  ;;  %5260 = vmatprep.mubr.msk.f32.mxu0 %vm5891_vm0, %v5892_v13 }
 0xe4a   :  { %5588 = vmatpush3.bf16.msra.mxu1 %v6291_v40 }
 0xe4b   :  { %5595 = vmatprep.subr.bf16.mxu1 %v5888_v10  ;;  %5594 = vmatpush3.bf16.msra.mxu0 %v6245_v6 }
 0xe4c   :  { %5601 = vmatprep.subr.bf16.mxu0 %v5888_v10 }
 0xe4d   :  { %5250 = vmatmul.mubr.msk.f32.vlgmr.msra.gmra.mrb[48].mxu1 %vm211_vm3, %v3527_v54 }
 0xe4e   :  { %5597 = vmatpush3.bf16.msra.mxu1 %v6295_v41  ;;  %5271 = vmatprep.mubr.msk.f32.mxu1 %vm5891_vm0, %v5892_v13 }
 0xe4f   :  { %5598 = vmatprep.subr.bf16.mxu1 %v5888_v10 }
 0xe52   :  { %5600 = vmatpush3.bf16.msra.mxu1 %v6300_v47 }
 0xe53   :  { %5607 = vmatprep.subr.bf16.mxu1 %v5888_v10 }
 0xf18   :  { %v3598_v55 = vpop.f32.mrb[46].mxu1  ;;  %v3668_v56 = vpop.f32.mrb[38].mxu0 }
 0xf19   :  { %v3743_v57 = vadd.f32 %v3742_v35, %v3598_v55  ;;  %v5229_v58 = vpop.f32.mrb[47].mxu1  ;;  %v5240_v42 = vpop.f32.mrb[39].mxu0  ;;  %v3751_v61 = vadd.f32 %v3750_v60, %v3668_v56  ;;  %v4226_v35 = vld [vmem:[#allocation4 + $0xe] sm:$0x3] }
 0xf1b   :  { %v4476_v59 = vmul.f32 -1.442695, %v3743_v57  ;;  %v4477_v62 = vmul.f32 -1.442695, %v3751_v61 }
 0xf1d   :  { %5825 = vpow2.f32 %v4476_v59 }
 0xf1e   :  { %5827 = vpow2.f32 %v4477_v62 }
 0xf20   :  { %v3738_v0 = vpop.f32.mrb[48].mxu1 }
 0xf21   :  { %v5251_v1 = vpop.f32.mrb[49].mxu1  ;;  %v3739_v8 = vadd.f32 %v6338_v28, %v3738_v0 }
 0xf27   :  { %v5826_v3 = vpop.eup %5825 }
 0xf28   :  { %v3747_v4 = vadd.f32 1.0, %v5826_v3  ;;  %v5828_v5 = vpop.eup %5827 }
 0xf29   :  { %v3755_v7 = vadd.f32 1.0, %v5828_v5 }
 0xf2a   :  { %5829 = vrcp.f32 %v3747_v4  ;;  %v4234_v4 = vld [vmem:[#allocation5 + $0xe] sm:$0x3] }
 0xf2b   :  { %5831 = vrcp.f32 %v3755_v7 }
 0xf34   :  { %v5830_v9 = vpop.eup %5829 }
 0xf35   :  { %v3759_v11 = vmul.f32 %v5830_v9, %v3739_v8  ;;  %v5832_v63 = vpop.eup %5831 }
 0xf36   :  { %v3762_v15 = vsub.f32 1.0, %v5832_v63  ;;  %v3764_v18 = vmul.f32 %v5832_v63, %v3527_v54 }
 0xf37   :  { %v3760_v14 = vadd.f32 %v3759_v11, %v3758_v12 }
 0xf39   :  { %5833 = vtanh.f32 %v3760_v14 }
 0xf43   :  { %v5834_v16 = vpop.eup %5833 }
 0xf44   :  { %v3763_v17 = vmul.f32 %v5834_v16, %v3762_v15 }
 0xf46   :  { %v3765_v19 = vadd.f32 %v3764_v18, %v3763_v17 }
 0xf48   :  { %3766 = vst.msk [vmem:[#allocation2 + $0xa] sm:$0x3] %vm512_vm4, %v3765_v19  ;;  %5261 = vmatmul.mubr.msk.f32.vlgmr.msra.gmra.mrb[40].mxu0 %vm211_vm3, %v3765_v19  ;;  %5272 = vmatmul.mubr.msk.f32.vlgmr.msra.gmra.mrb[50].mxu1 %vm211_vm3, %v3765_v19 }
 0xf49   :  { %5603 = vmatpush3.bf16.msra.mxu0 %v6289_v37  ;;  %5282 = vmatprep.mubr.msk.f32.mxu0 %vm5891_vm0, %v5892_v13 }
 0xf4a   :  { %5604 = vmatprep.subr.bf16.mxu0 %v5888_v10  ;;  %5609 = vmatpush3.bf16.msra.mxu1 %v6240_v2 }
 0xf4b   :  { %5610 = vmatprep.subr.bf16.mxu1 %v5888_v10  ;;  %5293 = vmatprep.mubr.msk.f32.mxu1 %vm5891_vm0, %v5892_v13 }
 0xf4d   :  { %5606 = vmatpush3.bf16.msra.mxu0 %v6291_v40 }
 0xf4e   :  { %5613 = vmatprep.subr.bf16.mxu0 %v5888_v10  ;;  %5612 = vmatpush3.bf16.msra.mxu1 %v6245_v6 }
 0xf4f   :  { %5619 = vmatprep.subr.bf16.mxu1 %v5888_v10 }
 0xf50   :  { %5283 = vmatmul.mubr.msk.f32.vlgmr.msra.gmra.mrb[42].mxu0 %vm211_vm3, %v3765_v19 }
 0xf51   :  { %5615 = vmatpush3.bf16.msra.mxu0 %v6295_v41  ;;  %5304 = vmatprep.mubr.msk.f32.mxu0 %vm5891_vm0, %v5892_v13 }
 0xf52   :  { %5616 = vmatprep.subr.bf16.mxu0 %v5888_v10 }
 0xf55   :  { %5618 = vmatpush3.bf16.msra.mxu0 %v6300_v47 }
 0xf56   :  { %5626 = vmatprep.subr.bf16.mxu0 %v4516_v51 }
0x101b   :  { %v3836_v2 = vpop.f32.mrb[40].mxu0  ;;  %v3906_v21 = vpop.f32.mrb[50].mxu1 }
0x101c   :  { %v3981_v22 = vadd.f32 %v3980_v20, %v3836_v2  ;;  %v5262_v23 = vpop.f32.mrb[41].mxu0  ;;  %v5273_v24 = vpop.f32.mrb[51].mxu1  ;;  %v3989_v26 = vadd.f32 %v3988_v25, %v3906_v21 }
0x101e   :  { %v4481_v6 = vmul.f32 -1.442695, %v3981_v22  ;;  %v4482_v27 = vmul.f32 -1.442695, %v3989_v26 }
0x1020   :  { %5835 = vpow2.f32 %v4481_v6 }
0x1021   :  { %5837 = vpow2.f32 %v4482_v27 }
0x1023   :  { %v3976_v43 = vpop.f32.mrb[42].mxu0 }
0x1024   :  { %v5284_v41 = vpop.f32.mrb[43].mxu0  ;;  %v3977_v47 = vadd.f32 %v6338_v28, %v3976_v43 }
0x102a   :  { %v5836_v46 = vpop.eup %5835 }
0x102b   :  { %v3985_v29 = vadd.f32 1.0, %v5836_v46  ;;  %v5838_v30 = vpop.eup %5837 }
0x102c   :  { %v3993_v31 = vadd.f32 1.0, %v5838_v30 }
0x102d   :  { %5839 = vrcp.f32 %v3985_v29 }
0x102e   :  { %5841 = vrcp.f32 %v3993_v31 }
0x1037   :  { %v5840_v32 = vpop.eup %5839 }
0x1038   :  { %v3997_v33 = vmul.f32 %v5840_v32, %v3977_v47  ;;  %v5842_v38 = vpop.eup %5841 }
0x1039   :  { %v4000_v39 = vsub.f32 1.0, %v5842_v38  ;;  %v4002_v48 = vmul.f32 %v5842_v38, %v3765_v19 }
0x103a   :  { %v3998_v36 = vadd.f32 %v3997_v33, %v3996_v34 }
0x103c   :  { %5843 = vtanh.f32 %v3998_v36 }
0x1046   :  { %v5844_v44 = vpop.eup %5843 }
0x1047   :  { %v4001_v45 = vmul.f32 %v5844_v44, %v4000_v39 }
0x1049   :  { %v4003_v49 = vadd.f32 %v4002_v48, %v4001_v45 }
0x104b   :  { %4004 = vst.msk [vmem:[#allocation2 + $0xc] sm:$0x3] %vm512_vm4, %v4003_v49  ;;  %5294 = vmatmul.mubr.msk.f32.vlgmr.msra.gmra.mrb[52].mxu1 %vm211_vm3, %v4003_v49  ;;  %5305 = vmatmul.mubr.msk.f32.vlgmr.msra.gmra.mrb[44].mxu0 %vm211_vm3, %v4003_v49 }
0x104c   :  { %5621 = vmatpush3.bf16.msra.mxu1 %v6289_v37  ;;  %5326 = vmatprep.mubr.msk.f32.mxu0 %vm211_vm3, %v4253_v50  ;;  %v4218_v37 = vld [vmem:[#allocation3 + $0xe] sm:$0x3] }
0x104d   :  { %5622 = vmatprep.subr.bf16.mxu1 %v5888_v10  ;;  %5315 = vmatprep.mubr.msk.f32.mxu1 %vm5891_vm0, %v5892_v13 }
0x104e   :  { %5628 = vmatpush3.bf16.msra.mxu0 %v4516_v51 }
0x104f   :  { %5630 = vmatprep.subr.bf16.mxu0 %v4526_v52 }
0x1050   :  { %5624 = vmatpush3.bf16.msra.mxu1 %v6291_v40 }
0x1052   :  { %5632 = vmatpush3.bf16.msra.mxu0 %v4526_v52 }
0x1053   :  { %5316 = vmatmul.mubr.msk.f32.vlgmr.msra.gmra.mrb[54].mxu1 %vm211_vm3, %v4003_v49 }
0x111e   :  { %v4074_v10 = vpop.f32.mrb[52].mxu1  ;;  %v4144_v53 = vpop.f32.mrb[44].mxu0 }
0x111f   :  { %v4219_v13 = vadd.f32 %v4218_v37, %v4074_v10  ;;  %v5295_v54 = vpop.f32.mrb[53].mxu1  ;;  %v5306_v40 = vpop.f32.mrb[45].mxu0  ;;  %v4227_v56 = vadd.f32 %v4226_v35, %v4144_v53 }
0x1121   :  { %v4486_v55 = vmul.f32 -1.442695, %v4219_v13  ;;  %v4487_v57 = vmul.f32 -1.442695, %v4227_v56 }
0x1123   :  { %5845 = vpow2.f32 %v4486_v55 }
0x1124   :  { %5847 = vpow2.f32 %v4487_v57 }
0x1126   :  { %v4214_v58 = vpop.f32.mrb[54].mxu1 }
0x1127   :  { %v5317_v42 = vpop.f32.mrb[55].mxu1  ;;  %v4215_v0 = vadd.f32 %v6338_v28, %v4214_v58  ;;  %v4488_v28 = vld [vmem:[%s6539_s10] ss:$0 sm:$0xff]  ;;  %s5893_s10 = smov [#allocation6]  }
0x1128   :  { %s4379_s14 = sshll.u32 %s5893_s10, 4  ;;  %s4380_s14 = int_to_ptr.vmem [resolvable:$true] %s4379_s14 }
0x1129   :  { %s5863_s15 = scalar_lea.vmem %s4380_s14, 64  ;;  %p5868_p1 = scmp.lt.s32.totalorder %s4380_s14, %s4380_s14 }
0x112a   :  { %p5864_p0 = scmp.ne.s32.totalorder %s4380_s14, %s5863_s15  ;;  %p5869_p2 = scmp.lt.s32.totalorder %s5863_s15, %s5863_s15 }
0x112c   :  { %p5870_p3 = por %p5869_p2, %p5868_p1 }
0x112d   :  { %v5846_v59 = vpop.eup %5845 }
0x112e   :  { %v4223_v60 = vadd.f32 1.0, %v5846_v59  ;;  %v5848_v61 = vpop.eup %5847  ;;  %p5871_p4 = pnand %p5870_p3, %p5864_p0 }
0x112f   :  { %v4231_v62 = vadd.f32 1.0, %v5848_v61 }
0x1130   :  { %5849 = vrcp.f32 %v4223_v60 }
0x1131   :  { %5851 = vrcp.f32 %v4231_v62 }
0x113a   :  { %v5850_v1 = vpop.eup %5849 }
0x113b   :  { %v4235_v3 = vmul.f32 %v5850_v1, %v4215_v0  ;;  %v5852_v7 = vpop.eup %5851 }
0x113c   :  { %v4238_v8 = vsub.f32 1.0, %v5852_v7  ;;  %v4240_v11 = vmul.f32 %v5852_v7, %v4003_v49 }
0x113d   :  { %v4236_v5 = vadd.f32 %v4235_v3, %v4234_v4 }
0x113f   :  { %5853 = vtanh.f32 %v4236_v5 }
0x1149   :  { %v5854_v9 = vpop.eup %5853 }
0x114a   :  { %v4239_v12 = vmul.f32 %v5854_v9, %v4238_v8 }
0x114c   :  { %v4241_v14 = vadd.f32 %v4240_v11, %v4239_v12 }
0x114e   :  { %4242 = vst.msk [vmem:[#allocation2 + $0xe] sm:$0x3] %vm512_vm4, %v4241_v14  ;;  %4244 = vst.msk [vmem:[#allocation6 + $0x2] sm:$0x3] %vm512_vm4, %v4241_v14 }
0x1155   :  { %v4254_v63 = vld [vmem:[#allocation2 + $0x8] sm:$0xff] }
0x1156   :  { %5327 = vmatmul.mubr.msk.f32.vlgmr.msra.gmra.mrb[46].mxu0 %vm211_vm3, %v4254_v63 }
0x1229   :  { %v5328_v15 = vpop.f32.mrb[46].mxu0 }
0x122a   :  { %v4340_v16 = vadd.f32 %v5328_v15, %v4488_v28  ;;  %v4334_v17 = vpop.f32.mrb[47].mxu0 }
0x122b   :  { %v4335_v18 = vadd.f32 %v4488_v28, %v4334_v17 }
0x122c   :  { %v4347_v19 = vsel %vm4343_vm5, %v4340_v16, -inf }
0x122d   :  { %4348 = vmax.xlane.f32.xlu1 %v4347_v19  ;;  %v4344_v2 = vsel %vm4343_vm5, %v4335_v18, -inf }
0x122e   :  { %4345 = vmax.xlane.f32.xlu0 %v4344_v2 }
0x12ba   :  { %v4349_v20 = vpop.xlane.xlu1 %4348 }
0x12bb   :  { %v4351_v21 = vsub.f32 %v4340_v16, %v4349_v20  ;;  %v4346_v22 = vpop.xlane.xlu0 %4345 }
0x12bc   :  { %v4350_v23 = vsub.f32 %v4335_v18, %v4346_v22 }
0x12bd   :  { %v4354_v24 = vmul.f32 1.442695, %v4351_v21 }
0x12be   :  { %v4352_v6 = vmul.f32 1.442695, %v4350_v23 }
0x12c0   :  { %5855 = vpow2.f32 %v4352_v6 }
0x12c1   :  { %5857 = vpow2.f32 %v4354_v24 }
0x12ca   :  { %v5856_v25 = vpop.eup %5855 }
0x12cb   :  { %v4356_v26 = vsel %vm4343_vm5, %v5856_v25, 0.0  ;;  %v5858_v27 = vpop.eup %5857 }
0x12cc   :  { %4357 = vadd.xlane.f32.xlu0 %v4356_v26  ;;  %v4359_v43 = vsel %vm4343_vm5, %v5858_v27, 0.0 }
0x12d0   :  { %4360 = vadd.xlane.f32.xlu0 %v4359_v43 }
0x12d1   :  { %5874 = shalt.err (!%p5871_p4)
}
0x12d2   :  { %s5875_s18 = scalar_lea.hbm %s6541_s12, 64 }
0x12d3   :  { %p5876_p5 = scmp.ne.s32.totalorder %s6541_s12, %s5875_s18  ;;  %p5879_p6 = scmp.lt.u32.totalorder %s5875_s18, %s6541_s12 }
0x12d5   :  { %p5881_p7 = pnand %p5879_p6, %p5876_p5 }
0x12d7   :  { %5884 = shalt.err (!%p5881_p7)
}
0x12d8   :  { %s5894_s21 = smov 32   ;;  %s5895_s4 = smov 2  }
0x12d9   :  { %4385 = dma.vmem_to_hbm [thread:$0]  %s4380_s14, 64, %s6541_s12, [#allocation7], %s5894_s21, %s5894_s21, %s5895_s4  }
0x1359   :  { %v4358_v41 = vpop.xlane.xlu0 %4357 }
0x135a   :  { %5859 = vlog2.f32 %v4358_v41 }
0x135d   :  { %v4361_v46 = vpop.xlane.xlu0 %4360 }
0x135e   :  { %5861 = vlog2.f32 %v4361_v46 }
0x1364   :  { %v5860_v29 = vpop.eup %5859 }
0x1365   :  { %v4363_v30 = vmul.f32 0.6931472, %v5860_v29 }
0x1367   :  { %v4366_v31 = vadd.f32 %v4363_v30, %v4346_v22 }
0x1368   :  { %v5862_v47 = vpop.eup %5861 }
0x1369   :  { %v4368_v32 = vsub.f32 %v4335_v18, %v4366_v31  ;;  %v4365_v33 = vmul.f32 0.6931472, %v5862_v47 }
0x136b   :  { %4370 = vst.msk [vmem:[%s6540_s11] sm:$0xff] %vm4343_vm5, %v4368_v32  ;;  %v4367_v34 = vadd.f32 %v4365_v33, %v4349_v20 }
0x136d   :  { %v4369_v36 = vsub.f32 %v4340_v16, %v4367_v34 }
0x136f   :  { %4371 = vst.msk [vmem:[%s6540_s11 + $0x8] sm:$0xff] %vm4343_vm5, %v4369_v36 }
0x1370   :  { %5885 = dma.done.wait [#allocation7], 64  }
0x1371   :  { %5886 = vsyncadd [#allocation7], 4294967232 }
0x1372   :  { %4391 = vsyncpa [#allocation7], 1 }

</bundles_post_ra>
